<compile_context>
chip_gen: v5e
topology: v5e:2x2
jax: 0.10.0
libtpu: 0.0.40
codegen_flags: <defaults>
</compile_context>

<pallas_src>
import jax
import jax.numpy as jnp
from jax.experimental import pallas as pl
from jax.experimental.pallas import tpu as pltpu


def _round_up(a, b):
    return (a + b - 1) // b * b


def _choose_tiling(G, HW, max_tok=2048):
    """Pick (frames per block k, token tile thw, padded token extent HWp)."""
    assert max_tok % 128 == 0
    if HW <= max_tok:
        # Full-extent lane tile; group k whole frames per grid step so each
        # step is >= ~max_tok tokens even for small frames (k divides G).
        k = 1
        for cand in range(min(G, max(1, max_tok // HW)), 0, -1):
            if G % cand == 0:
                k = cand
                break
        return k, HW, HW
    # Large frames: tile H*W.  Prefer the largest >=1024, 128-multiple tile
    # that minimizes padding -- never fall back to tiny exact divisors.
    lo = min(1024, max_tok)
    best = None
    for cand in range(max_tok, lo - 1, -128):
        waste = _round_up(HW, cand) - HW
        key = (waste, -cand)
        if best is None or key < best[0]:
            best = (key, cand)
    thw = best[1]
    return 1, thw, _round_up(HW, thw)


# ----------------------------------------------------------------------------
# Pallas kernel: depth-expand + normalize + inverse_sigmoid + 2-layer MLP
# ----------------------------------------------------------------------------
def ray_pe_kernel(feat_ref, dep_ref, w1g_ref, b1_ref, w2t_ref, b2_ref, o_ref):
    """feat_ref: (k, 8, thw) f32   rows 0:3 = nbase, rows 3:6 = nbias
       dep_ref : (S, 1)      f32   depth samples
       w1g_ref : (3, D, S)   bf16  first Linear grouped by coordinate c
       b1_ref  : (D, 1)      f32
       w2t_ref : (D, D)      bf16  second Linear (transposed)
       b2_ref  : (D, 1)      f32
       o_ref   : (k, D, thw)       channel-major encoding
    """
    eps = 1e-3
    k = feat_ref.shape[0]
    d = dep_ref[...]                       # (S, 1) f32
    w1g = w1g_ref[...]                     # (3, D, S) bf16
    w2t = w2t_ref[...]                     # (D, D)    bf16
    b1 = b1_ref[...]                       # (D, 1)    f32
    b2 = b2_ref[...]                       # (D, 1)    f32
    for f in range(k):                     # small static unroll over frames
        blk = feat_ref[f]                  # (8, thw) f32
        acc = None
        for c in range(3):                 # x[n*3+c] = d_n * nbase[c] + nbias[c]
            xc = d * blk[c:c + 1, :] + blk[3 + c:4 + c, :]      # (S, thw) f32
            # same semantics as clamp(0,1) -> clamp(min=eps) on x and 1-x
            x1 = jnp.clip(xc, eps, 1.0)
            x2 = jnp.clip(1.0 - xc, eps, 1.0)
            xc = jnp.log(x1) - jnp.log(x2)                      # EUP, no divide
            p = jnp.dot(w1g[c], xc.astype(jnp.bfloat16),        # MXU, f32 acc
                        preferred_element_type=jnp.float32)
            acc = p if acc is None else acc + p
        h = jnp.maximum(acc + b1, 0.0)                          # (D, thw) f32
        y = jnp.dot(w2t, h.astype(jnp.bfloat16),
                    preferred_element_type=jnp.float32) + b2
        o_ref[f] = y.astype(o_ref.dtype)


def encode_rays_pallas(feat, dep, w1g, b1, w2t, b2, *, k, thw,
                       out_dtype=jnp.float32):
    """feat: (G, 8, HWp) f32 -> (G, D, HWp) channel-major encoding."""
    G, C8, HWp = feat.shape
    S = dep.shape[0]
    D = w2t.shape[0]
    assert G % k == 0 and HWp % thw == 0
    grid = (G // k, HWp // thw)
    return pl.pallas_call(
        ray_pe_kernel,
        out_shape=jax.ShapeDtypeStruct((G, D, HWp), out_dtype),
        grid=grid,
        in_specs=[
            pl.BlockSpec((k, C8, thw), lambda g, s: (g, 0, s)),   # feature tile
            # constant operands: index_map never changes -> block stays resident
            pl.BlockSpec((S, 1), lambda g, s: (0, 0)),            # depths
            pl.BlockSpec((3, D, S), lambda g, s: (0, 0, 0)),      # W1 grouped
            pl.BlockSpec((D, 1), lambda g, s: (0, 0)),            # b1
            pl.BlockSpec((D, D), lambda g, s: (0, 0)),            # W2^T
            pl.BlockSpec((D, 1), lambda g, s: (0, 0)),            # b2
        ],
        out_specs=pl.BlockSpec((k, D, thw), lambda g, s: (g, 0, s)),
        compiler_params=pltpu.CompilerParams(
            dimension_semantics=("parallel", "parallel")),
    )(feat, dep, w1g, b1, w2t, b2)


# ----------------------------------------------------------------------------
# Glue: per-token ray features (tiny, plain JAX) and parameter packing
# ----------------------------------------------------------------------------
def build_ray_features(camera, T_world_pseudoCam, T_world_local, H, W,
                       ray_points_scale):
    """Per-token normalized ray features, channel-major (B*T, 8, H*W) f32."""
    # TODO(synk): grid_2d / ray_points_snippet source was not provided with the
    # module; this is a simplified deterministic pinhole-ray construction
    # (T_camera_pseudoCam unused), algebraically identical to the v2 placeholder.
    B, T = camera.shape[:2]
    fx, fy = camera[..., 2], camera[..., 3]
    cx, cy = camera[..., 4], camera[..., 5]
    u = jnp.arange(W, dtype=jnp.float32) + 0.5
    v = jnp.arange(H, dtype=jnp.float32) + 0.5
    uu, vv = jnp.meshgrid(u, v, indexing="xy")                     # (H, W)
    dx = (uu - cx[..., None, None]) / fx[..., None, None]          # (B,T,H,W)
    dy = (vv - cy[..., None, None]) / fy[..., None, None]
    # combined pseudoCam->local rigid transform: p_local = A @ dir * depth + bvec
    Tw = T_world_pseudoCam.reshape(B, T, 3, 4)
    Tl = T_world_local.reshape(B, 3, 4)
    Rw, tw = Tw[..., :3], Tw[..., 3]
    Rl, tl = Tl[..., :3], Tl[..., 3]
    A = jnp.einsum("bji,btjk->btik", Rl, Rw)                       # Rl^T @ Rw
    bvec = jnp.einsum("bji,btj->bti", Rl, tw - tl[:, None])        # (B,T,3)
    base = (A[..., 0][..., None, None] * dx[:, :, None]
            + A[..., 1][..., None, None] * dy[:, :, None]
            + A[..., 2][..., None, None])                          # (B,T,3,H,W)
    s = jnp.asarray(ray_points_scale, jnp.float32)
    cmin = jnp.stack([s[0], s[2], s[4]])
    crng = jnp.stack([s[1] - s[0], s[3] - s[2], s[5] - s[4]])
    crng = jnp.where(crng == 0.0, 1.0, crng)       # guard degenerate ranges
    inv = 1.0 / crng
    G, HW = B * T, H * W
    nbase = (base * inv[None, None, :, None, None]).reshape(G, 3, HW)
    nbias = ((bvec - cmin) * inv).reshape(G, 3, 1)
    nbias = jnp.broadcast_to(nbias, (G, 3, HW))
    pad = jnp.zeros((G, 2, HW), jnp.float32)
    return jnp.concatenate([nbase, nbias, pad], axis=1)            # (G, 8, HW)


def add_ray_pe_forward(params, images_feat, camera, T_camera_pseudoCam,
                       T_world_pseudoCam, T_world_local, *,
                       ray_points_scale, num_samples, min_depth, max_depth,
                       height, width, max_tok=2048, out_dtype=jnp.float32):
    # NOTE: as in the reference module's code path, images_feat only provides
    # (B, T); the returned tensor is the ray positional encoding itself.
    B, T = images_feat.shape[0], images_feat.shape[1]
    H, W = height, width
    G, HW = B * T, H * W
    S = num_samples
    D = params["w1"].shape[1]

    feat = build_ray_features(camera, T_world_pseudoCam, T_world_local,
                              H, W, ray_points_scale)              # (G, 8, HW)

    k, thw, HWp = _choose_tiling(G, HW, max_tok=max_tok)
    if HWp != HW:
        feat = jnp.pad(feat, ((0, 0), (0, 0), (0, HWp - HW)))

    depths = jnp.linspace(min_depth, max_depth, S, dtype=jnp.float32)
    # first Linear regrouped by coordinate: w1g[c, :, n] = W1[n*3+c, :]
    w1g = jnp.transpose(params["w1"].reshape(S, 3, D), (1, 2, 0)).astype(jnp.bfloat16)
    w2t = params["w2"].T.astype(jnp.bfloat16)

    enc = encode_rays_pallas(
        feat, depths[:, None], w1g,
        params["b1"].astype(jnp.float32)[:, None],
        w2t, params["b2"].astype(jnp.float32)[:, None],
        k=k, thw=thw, out_dtype=out_dtype)                         # (G, D, HWp)
    if HWp != HW:
        enc = enc[:, :, :HW]
    # free, byte-identical reshape to the module's (B, T, dim_out, H, W)
    return enc.reshape(B, T, D, H, W)


def init_params(key, num_samples, dim_out):
    k1, k2, k3, k4 = jax.random.split(key, 4)
    fin = 3 * num_samples
    w1 = jax.random.normal(k1, (fin, dim_out), jnp.float32) / jnp.sqrt(fin)
    b1 = jax.random.normal(k2, (dim_out,), jnp.float32) * 0.01
    w2 = jax.random.normal(k3, (dim_out, dim_out), jnp.float32) / jnp.sqrt(dim_out)
    b2 = jax.random.normal(k4, (dim_out,), jnp.float32) * 0.01
    return {"w1": w1, "b1": b1, "w2": w2, "b2": b2}


# Plain-JAX reference of the module math (token-major).  The matmul operands
# are rounded to bf16 to mirror the kernel's MXU casts so the comparison is
# tight; everything else is f32.
def _reference(feat, depths, params, B, T, H, W):
    G, _, HW = feat.shape
    S = depths.shape[0]
    nb, bb = feat[:, 0:3, :], feat[:, 3:6, :]
    x = depths[None, :, None, None] * nb[:, None] + bb[:, None]   # (G,S,3,HW)
    x = x.reshape(G, S * 3, HW)
    x = jnp.clip(x, 0.0, 1.0)                                     # module clamps
    x1 = jnp.maximum(x, 1e-3)
    x2 = jnp.maximum(1.0 - x, 1e-3)
    x = jnp.log(x1 / x2)
    xt = jnp.moveaxis(x, 1, 2).reshape(G * HW, S * 3)             # token-major
    w1 = params["w1"].astype(jnp.bfloat16).astype(jnp.float32)
    w2 = params["w2"].astype(jnp.bfloat16).astype(jnp.float32)
    xq = xt.astype(jnp.bfloat16).astype(jnp.float32)
    h = jnp.maximum(xq @ w1 + params["b1"], 0.0)
    hq = h.astype(jnp.bfloat16).astype(jnp.float32)
    y = hq @ w2 + params["b2"]
    D = w1.shape[1]
    return y.reshape(B, T, H, W, D).transpose(0, 1, 4, 2, 3)


if __name__ == "__main__":
    B, T, C, H, W = 2, 2, 4, 16, 16
    num_samples = 8
    dim_out = 32
    ray_points_scale = [-2.0, 2.0, -1.5, 0.0, 0.25, 4.25]
    min_depth, max_depth = 0.25, 5.25

    key = jax.random.PRNGKey(0)
    kf, kp = jax.random.split(key)
    images_feat = jax.random.normal(kf, (B, T, C, H, W), jnp.float32)

    # camera: (B, T, 6) = width, height, fx, fy, cx, cy
    cam_row = jnp.array([W, H, 16.0, 16.0, W / 2.0, H / 2.0], jnp.float32)
    camera = jnp.broadcast_to(cam_row, (B, T, 6))

    # identity rigid transforms, flattened 3x4 row-major -> 12
    eye34 = jnp.concatenate(
        [jnp.eye(3, dtype=jnp.float32), jnp.zeros((3, 1), jnp.float32)],
        axis=1).reshape(-1)
    T_camera_pseudoCam = jnp.broadcast_to(eye34, (B, T, 12))
    T_world_pseudoCam = jnp.broadcast_to(eye34, (B, T, 12))
    T_world_local = jnp.broadcast_to(eye34, (B, 12))

    params = init_params(kp, num_samples, dim_out)

    out = add_ray_pe_forward(
        params, images_feat, camera, T_camera_pseudoCam, T_world_pseudoCam,
        T_world_local, ray_points_scale=ray_points_scale,
        num_samples=num_samples, min_depth=min_depth, max_depth=max_depth,
        height=H, width=W)
    out = jax.block_until_ready(out)
    assert out.shape == (B, T, dim_out, H, W), out.shape

    # sanity check vs plain-JAX reference of the module math
    feat_ref = build_ray_features(camera, T_world_pseudoCam, T_world_local,
                                  H, W, ray_points_scale)
    depths = jnp.linspace(min_depth, max_depth, num_samples, dtype=jnp.float32)
    ref = _reference(feat_ref, depths, params, B, T, H, W)
    err = float(jnp.max(jnp.abs(out - ref)))
    assert jnp.allclose(out, ref, atol=2e-2, rtol=2e-2), err

    print("KERNEL_OK")
</pallas_src>

<mosaic_0001>
module attributes {stable_mosaic.version = 11 : i64} {
  func.func @ray_pe_kernel(%arg0: i32, %arg1: i32, %arg2: memref<4x8x256xf32, #tpu.memory_space<vmem>>, %arg3: memref<8x1xf32, #tpu.memory_space<vmem>>, %arg4: memref<3x32x8xbf16, #tpu.memory_space<vmem>>, %arg5: memref<32x1xf32, #tpu.memory_space<vmem>>, %arg6: memref<32x32xbf16, #tpu.memory_space<vmem>>, %arg7: memref<32x1xf32, #tpu.memory_space<vmem>>, %arg8: memref<4x32x256xf32, #tpu.memory_space<vmem>>) attributes {dimension_semantics = [#tpu.dimension_semantics<parallel>, #tpu.dimension_semantics<parallel>], iteration_bounds = array<i64: 1, 1>, scalar_prefetch = 0 : i64, scratch_operands = 0 : i64, tpu.core_type = #tpu.core_type<tc>, window_params = [{transform_indices = @transform_0, window_bounds = array<i64: 4, 8, 256>}, {pipeline_mode = #tpu.pipeline_mode<synchronous>, transform_indices = @transform_1, window_bounds = array<i64: 8, 1>}, {pipeline_mode = #tpu.pipeline_mode<synchronous>, transform_indices = @transform_2, window_bounds = array<i64: 3, 32, 8>}, {pipeline_mode = #tpu.pipeline_mode<synchronous>, transform_indices = @transform_3, window_bounds = array<i64: 32, 1>}, {pipeline_mode = #tpu.pipeline_mode<synchronous>, transform_indices = @transform_4, window_bounds = array<i64: 32, 32>}, {pipeline_mode = #tpu.pipeline_mode<synchronous>, transform_indices = @transform_5, window_bounds = array<i64: 32, 1>}, {transform_indices = @transform_6, window_bounds = array<i64: 4, 32, 256>}]} {
    %c0 = arith.constant 0 : index
    %c0_0 = arith.constant 0 : index
    %0 = vector.load %arg3[%c0, %c0_0] : memref<8x1xf32, #tpu.memory_space<vmem>>, vector<8x1xf32>
    %c0_1 = arith.constant 0 : index
    %c0_2 = arith.constant 0 : index
    %c0_3 = arith.constant 0 : index
    %1 = vector.load %arg4[%c0_1, %c0_2, %c0_3] : memref<3x32x8xbf16, #tpu.memory_space<vmem>>, vector<3x32x8xbf16>
    %c0_4 = arith.constant 0 : index
    %c0_5 = arith.constant 0 : index
    %2 = vector.load %arg6[%c0_4, %c0_5] : memref<32x32xbf16, #tpu.memory_space<vmem>>, vector<32x32xbf16>
    %c0_6 = arith.constant 0 : index
    %c0_7 = arith.constant 0 : index
    %3 = vector.load %arg5[%c0_6, %c0_7] : memref<32x1xf32, #tpu.memory_space<vmem>>, vector<32x1xf32>
    %c0_8 = arith.constant 0 : index
    %c0_9 = arith.constant 0 : index
    %4 = vector.load %arg7[%c0_8, %c0_9] : memref<32x1xf32, #tpu.memory_space<vmem>>, vector<32x1xf32>
    %c0_10 = arith.constant 0 : index
    %c0_11 = arith.constant 0 : index
    %c0_12 = arith.constant 0 : index
    %5 = vector.load %arg2[%c0_10, %c0_11, %c0_12] : memref<4x8x256xf32, #tpu.memory_space<vmem>>, vector<1x8x256xf32>
    %6 = vector.shape_cast %5 : vector<1x8x256xf32> to vector<8x256xf32>
    %7 = vector.extract_strided_slice %6 {offsets = [0, 0], sizes = [1, 256], strides = [1, 1]} : vector<8x256xf32> to vector<1x256xf32>
    %8 = vector.broadcast %0 : vector<8x1xf32> to vector<8x256xf32>
    %9 = vector.broadcast %7 : vector<1x256xf32> to vector<8x256xf32>
    %10 = arith.mulf %8, %9 : vector<8x256xf32>
    %11 = vector.extract_strided_slice %6 {offsets = [3, 0], sizes = [1, 256], strides = [1, 1]} : vector<8x256xf32> to vector<1x256xf32>
    %12 = vector.broadcast %11 : vector<1x256xf32> to vector<8x256xf32>
    %13 = arith.addf %10, %12 : vector<8x256xf32>
    %cst = arith.constant 1.000000e-03 : f32
    %cst_13 = arith.constant 1.000000e+00 : f32
    %14 = vector.broadcast %cst : f32 to vector<8x256xf32>
    %15 = arith.maximumf %14, %13 : vector<8x256xf32>
    %16 = vector.broadcast %cst_13 : f32 to vector<8x256xf32>
    %17 = arith.minimumf %16, %15 : vector<8x256xf32>
    %cst_14 = arith.constant 1.000000e+00 : f32
    %18 = vector.broadcast %cst_14 : f32 to vector<8x256xf32>
    %19 = arith.subf %18, %13 : vector<8x256xf32>
    %cst_15 = arith.constant 1.000000e-03 : f32
    %cst_16 = arith.constant 1.000000e+00 : f32
    %20 = vector.broadcast %cst_15 : f32 to vector<8x256xf32>
    %21 = arith.maximumf %20, %19 : vector<8x256xf32>
    %22 = vector.broadcast %cst_16 : f32 to vector<8x256xf32>
    %23 = arith.minimumf %22, %21 : vector<8x256xf32>
    %24 = math.log %17 : vector<8x256xf32>
    %25 = math.log %23 : vector<8x256xf32>
    %26 = arith.subf %24, %25 : vector<8x256xf32>
    %27 = vector.extract_strided_slice %1 {offsets = [0, 0, 0], sizes = [1, 32, 8], strides = [1, 1, 1]} : vector<3x32x8xbf16> to vector<1x32x8xbf16>
    %28 = vector.shape_cast %27 : vector<1x32x8xbf16> to vector<32x8xbf16>
    %29 = arith.truncf %26 : vector<8x256xf32> to vector<8x256xbf16>
    %cst_17 = arith.constant dense<0.000000e+00> : vector<32x256xf32>
    %30 = tpu.matmul %28, %29, %cst_17 {dimension_numbers = #tpu.dot_dimension_numbers<[1], [0], [0], [1], [0, 0, 1, 1], [], []>} : vector<32x8xbf16>, vector<8x256xbf16>, vector<32x256xf32> -> vector<32x256xf32>
    %31 = vector.extract_strided_slice %6 {offsets = [1, 0], sizes = [1, 256], strides = [1, 1]} : vector<8x256xf32> to vector<1x256xf32>
    %32 = vector.broadcast %0 : vector<8x1xf32> to vector<8x256xf32>
    %33 = vector.broadcast %31 : vector<1x256xf32> to vector<8x256xf32>
    %34 = arith.mulf %32, %33 : vector<8x256xf32>
    %35 = vector.extract_strided_slice %6 {offsets = [4, 0], sizes = [1, 256], strides = [1, 1]} : vector<8x256xf32> to vector<1x256xf32>
    %36 = vector.broadcast %35 : vector<1x256xf32> to vector<8x256xf32>
    %37 = arith.addf %34, %36 : vector<8x256xf32>
    %cst_18 = arith.constant 1.000000e-03 : f32
    %cst_19 = arith.constant 1.000000e+00 : f32
    %38 = vector.broadcast %cst_18 : f32 to vector<8x256xf32>
    %39 = arith.maximumf %38, %37 : vector<8x256xf32>
    %40 = vector.broadcast %cst_19 : f32 to vector<8x256xf32>
    %41 = arith.minimumf %40, %39 : vector<8x256xf32>
    %cst_20 = arith.constant 1.000000e+00 : f32
    %42 = vector.broadcast %cst_20 : f32 to vector<8x256xf32>
    %43 = arith.subf %42, %37 : vector<8x256xf32>
    %cst_21 = arith.constant 1.000000e-03 : f32
    %cst_22 = arith.constant 1.000000e+00 : f32
    %44 = vector.broadcast %cst_21 : f32 to vector<8x256xf32>
    %45 = arith.maximumf %44, %43 : vector<8x256xf32>
    %46 = vector.broadcast %cst_22 : f32 to vector<8x256xf32>
    %47 = arith.minimumf %46, %45 : vector<8x256xf32>
    %48 = math.log %41 : vector<8x256xf32>
    %49 = math.log %47 : vector<8x256xf32>
    %50 = arith.subf %48, %49 : vector<8x256xf32>
    %51 = vector.extract_strided_slice %1 {offsets = [1, 0, 0], sizes = [1, 32, 8], strides = [1, 1, 1]} : vector<3x32x8xbf16> to vector<1x32x8xbf16>
    %52 = vector.shape_cast %51 : vector<1x32x8xbf16> to vector<32x8xbf16>
    %53 = arith.truncf %50 : vector<8x256xf32> to vector<8x256xbf16>
    %cst_23 = arith.constant dense<0.000000e+00> : vector<32x256xf32>
    %54 = tpu.matmul %52, %53, %cst_23 {dimension_numbers = #tpu.dot_dimension_numbers<[1], [0], [0], [1], [0, 0, 1, 1], [], []>} : vector<32x8xbf16>, vector<8x256xbf16>, vector<32x256xf32> -> vector<32x256xf32>
    %55 = arith.addf %30, %54 : vector<32x256xf32>
    %56 = vector.extract_strided_slice %6 {offsets = [2, 0], sizes = [1, 256], strides = [1, 1]} : vector<8x256xf32> to vector<1x256xf32>
    %57 = vector.broadcast %0 : vector<8x1xf32> to vector<8x256xf32>
    %58 = vector.broadcast %56 : vector<1x256xf32> to vector<8x256xf32>
    %59 = arith.mulf %57, %58 : vector<8x256xf32>
    %60 = vector.extract_strided_slice %6 {offsets = [5, 0], sizes = [1, 256], strides = [1, 1]} : vector<8x256xf32> to vector<1x256xf32>
    %61 = vector.broadcast %60 : vector<1x256xf32> to vector<8x256xf32>
    %62 = arith.addf %59, %61 : vector<8x256xf32>
    %cst_24 = arith.constant 1.000000e-03 : f32
    %cst_25 = arith.constant 1.000000e+00 : f32
    %63 = vector.broadcast %cst_24 : f32 to vector<8x256xf32>
    %64 = arith.maximumf %63, %62 : vector<8x256xf32>
    %65 = vector.broadcast %cst_25 : f32 to vector<8x256xf32>
    %66 = arith.minimumf %65, %64 : vector<8x256xf32>
    %cst_26 = arith.constant 1.000000e+00 : f32
    %67 = vector.broadcast %cst_26 : f32 to vector<8x256xf32>
    %68 = arith.subf %67, %62 : vector<8x256xf32>
    %cst_27 = arith.constant 1.000000e-03 : f32
    %cst_28 = arith.constant 1.000000e+00 : f32
    %69 = vector.broadcast %cst_27 : f32 to vector<8x256xf32>
    %70 = arith.maximumf %69, %68 : vector<8x256xf32>
    %71 = vector.broadcast %cst_28 : f32 to vector<8x256xf32>
    %72 = arith.minimumf %71, %70 : vector<8x256xf32>
    %73 = math.log %66 : vector<8x256xf32>
    %74 = math.log %72 : vector<8x256xf32>
    %75 = arith.subf %73, %74 : vector<8x256xf32>
    %76 = vector.extract_strided_slice %1 {offsets = [2, 0, 0], sizes = [1, 32, 8], strides = [1, 1, 1]} : vector<3x32x8xbf16> to vector<1x32x8xbf16>
    %77 = vector.shape_cast %76 : vector<1x32x8xbf16> to vector<32x8xbf16>
    %78 = arith.truncf %75 : vector<8x256xf32> to vector<8x256xbf16>
    %cst_29 = arith.constant dense<0.000000e+00> : vector<32x256xf32>
    %79 = tpu.matmul %77, %78, %cst_29 {dimension_numbers = #tpu.dot_dimension_numbers<[1], [0], [0], [1], [0, 0, 1, 1], [], []>} : vector<32x8xbf16>, vector<8x256xbf16>, vector<32x256xf32> -> vector<32x256xf32>
    %80 = arith.addf %55, %79 : vector<32x256xf32>
    %81 = vector.broadcast %3 : vector<32x1xf32> to vector<32x256xf32>
    %82 = arith.addf %80, %81 : vector<32x256xf32>
    %cst_30 = arith.constant 0.000000e+00 : f32
    %83 = vector.broadcast %cst_30 : f32 to vector<32x256xf32>
    %84 = arith.maximumf %82, %83 : vector<32x256xf32>
    %85 = arith.truncf %84 : vector<32x256xf32> to vector<32x256xbf16>
    %cst_31 = arith.constant dense<0.000000e+00> : vector<32x256xf32>
    %86 = tpu.matmul %2, %85, %cst_31 {dimension_numbers = #tpu.dot_dimension_numbers<[1], [0], [0], [1], [0, 0, 1, 1], [], []>} : vector<32x32xbf16>, vector<32x256xbf16>, vector<32x256xf32> -> vector<32x256xf32>
    %87 = vector.broadcast %4 : vector<32x1xf32> to vector<32x256xf32>
    %88 = arith.addf %86, %87 : vector<32x256xf32>
    %c0_32 = arith.constant 0 : index
    %c0_33 = arith.constant 0 : index
    %c0_34 = arith.constant 0 : index
    %89 = vector.load %arg8[%c0_32, %c0_33, %c0_34] : memref<4x32x256xf32, #tpu.memory_space<vmem>>, vector<1x32x256xf32>
    %90 = vector.shape_cast %89 : vector<1x32x256xf32> to vector<32x256xf32>
    %91 = vector.shape_cast %88 : vector<32x256xf32> to vector<1x32x256xf32>
    tpu.vector_store %arg8[%c0_32, %c0_33, %c0_34], %91 {strides = array<i32>} : memref<4x32x256xf32, #tpu.memory_space<vmem>>, vector<1x32x256xf32>,
    %c1 = arith.constant 1 : index
    %c0_35 = arith.constant 0 : index
    %c0_36 = arith.constant 0 : index
    %92 = vector.load %arg2[%c1, %c0_35, %c0_36] : memref<4x8x256xf32, #tpu.memory_space<vmem>>, vector<1x8x256xf32>
    %93 = vector.shape_cast %92 : vector<1x8x256xf32> to vector<8x256xf32>
    %94 = vector.extract_strided_slice %93 {offsets = [0, 0], sizes = [1, 256], strides = [1, 1]} : vector<8x256xf32> to vector<1x256xf32>
    %95 = vector.broadcast %0 : vector<8x1xf32> to vector<8x256xf32>
    %96 = vector.broadcast %94 : vector<1x256xf32> to vector<8x256xf32>
    %97 = arith.mulf %95, %96 : vector<8x256xf32>
    %98 = vector.extract_strided_slice %93 {offsets = [3, 0], sizes = [1, 256], strides = [1, 1]} : vector<8x256xf32> to vector<1x256xf32>
    %99 = vector.broadcast %98 : vector<1x256xf32> to vector<8x256xf32>
    %100 = arith.addf %97, %99 : vector<8x256xf32>
    %cst_37 = arith.constant 1.000000e-03 : f32
    %cst_38 = arith.constant 1.000000e+00 : f32
    %101 = vector.broadcast %cst_37 : f32 to vector<8x256xf32>
    %102 = arith.maximumf %101, %100 : vector<8x256xf32>
    %103 = vector.broadcast %cst_38 : f32 to vector<8x256xf32>
    %104 = arith.minimumf %103, %102 : vector<8x256xf32>
    %cst_39 = arith.constant 1.000000e+00 : f32
    %105 = vector.broadcast %cst_39 : f32 to vector<8x256xf32>
    %106 = arith.subf %105, %100 : vector<8x256xf32>
    %cst_40 = arith.constant 1.000000e-03 : f32
    %cst_41 = arith.constant 1.000000e+00 : f32
    %107 = vector.broadcast %cst_40 : f32 to vector<8x256xf32>
    %108 = arith.maximumf %107, %106 : vector<8x256xf32>
    %109 = vector.broadcast %cst_41 : f32 to vector<8x256xf32>
    %110 = arith.minimumf %109, %108 : vector<8x256xf32>
    %111 = math.log %104 : vector<8x256xf32>
    %112 = math.log %110 : vector<8x256xf32>
    %113 = arith.subf %111, %112 : vector<8x256xf32>
    %114 = vector.extract_strided_slice %1 {offsets = [0, 0, 0], sizes = [1, 32, 8], strides = [1, 1, 1]} : vector<3x32x8xbf16> to vector<1x32x8xbf16>
    %115 = vector.shape_cast %114 : vector<1x32x8xbf16> to vector<32x8xbf16>
    %116 = arith.truncf %113 : vector<8x256xf32> to vector<8x256xbf16>
    %cst_42 = arith.constant dense<0.000000e+00> : vector<32x256xf32>
    %117 = tpu.matmul %115, %116, %cst_42 {dimension_numbers = #tpu.dot_dimension_numbers<[1], [0], [0], [1], [0, 0, 1, 1], [], []>} : vector<32x8xbf16>, vector<8x256xbf16>, vector<32x256xf32> -> vector<32x256xf32>
    %118 = vector.extract_strided_slice %93 {offsets = [1, 0], sizes = [1, 256], strides = [1, 1]} : vector<8x256xf32> to vector<1x256xf32>
    %119 = vector.broadcast %0 : vector<8x1xf32> to vector<8x256xf32>
    %120 = vector.broadcast %118 : vector<1x256xf32> to vector<8x256xf32>
    %121 = arith.mulf %119, %120 : vector<8x256xf32>
    %122 = vector.extract_strided_slice %93 {offsets = [4, 0], sizes = [1, 256], strides = [1, 1]} : vector<8x256xf32> to vector<1x256xf32>
    %123 = vector.broadcast %122 : vector<1x256xf32> to vector<8x256xf32>
    %124 = arith.addf %121, %123 : vector<8x256xf32>
    %cst_43 = arith.constant 1.000000e-03 : f32
    %cst_44 = arith.constant 1.000000e+00 : f32
    %125 = vector.broadcast %cst_43 : f32 to vector<8x256xf32>
    %126 = arith.maximumf %125, %124 : vector<8x256xf32>
    %127 = vector.broadcast %cst_44 : f32 to vector<8x256xf32>
    %128 = arith.minimumf %127, %126 : vector<8x256xf32>
    %cst_45 = arith.constant 1.000000e+00 : f32
    %129 = vector.broadcast %cst_45 : f32 to vector<8x256xf32>
    %130 = arith.subf %129, %124 : vector<8x256xf32>
    %cst_46 = arith.constant 1.000000e-03 : f32
    %cst_47 = arith.constant 1.000000e+00 : f32
    %131 = vector.broadcast %cst_46 : f32 to vector<8x256xf32>
    %132 = arith.maximumf %131, %130 : vector<8x256xf32>
    %133 = vector.broadcast %cst_47 : f32 to vector<8x256xf32>
    %134 = arith.minimumf %133, %132 : vector<8x256xf32>
    %135 = math.log %128 : vector<8x256xf32>
    %136 = math.log %134 : vector<8x256xf32>
    %137 = arith.subf %135, %136 : vector<8x256xf32>
    %138 = vector.extract_strided_slice %1 {offsets = [1, 0, 0], sizes = [1, 32, 8], strides = [1, 1, 1]} : vector<3x32x8xbf16> to vector<1x32x8xbf16>
    %139 = vector.shape_cast %138 : vector<1x32x8xbf16> to vector<32x8xbf16>
    %140 = arith.truncf %137 : vector<8x256xf32> to vector<8x256xbf16>
    %cst_48 = arith.constant dense<0.000000e+00> : vector<32x256xf32>
    %141 = tpu.matmul %139, %140, %cst_48 {dimension_numbers = #tpu.dot_dimension_numbers<[1], [0], [0], [1], [0, 0, 1, 1], [], []>} : vector<32x8xbf16>, vector<8x256xbf16>, vector<32x256xf32> -> vector<32x256xf32>
    %142 = arith.addf %117, %141 : vector<32x256xf32>
    %143 = vector.extract_strided_slice %93 {offsets = [2, 0], sizes = [1, 256], strides = [1, 1]} : vector<8x256xf32> to vector<1x256xf32>
    %144 = vector.broadcast %0 : vector<8x1xf32> to vector<8x256xf32>
    %145 = vector.broadcast %143 : vector<1x256xf32> to vector<8x256xf32>
    %146 = arith.mulf %144, %145 : vector<8x256xf32>
    %147 = vector.extract_strided_slice %93 {offsets = [5, 0], sizes = [1, 256], strides = [1, 1]} : vector<8x256xf32> to vector<1x256xf32>
    %148 = vector.broadcast %147 : vector<1x256xf32> to vector<8x256xf32>
    %149 = arith.addf %146, %148 : vector<8x256xf32>
    %cst_49 = arith.constant 1.000000e-03 : f32
    %cst_50 = arith.constant 1.000000e+00 : f32
    %150 = vector.broadcast %cst_49 : f32 to vector<8x256xf32>
    %151 = arith.maximumf %150, %149 : vector<8x256xf32>
    %152 = vector.broadcast %cst_50 : f32 to vector<8x256xf32>
    %153 = arith.minimumf %152, %151 : vector<8x256xf32>
    %cst_51 = arith.constant 1.000000e+00 : f32
    %154 = vector.broadcast %cst_51 : f32 to vector<8x256xf32>
    %155 = arith.subf %154, %149 : vector<8x256xf32>
    %cst_52 = arith.constant 1.000000e-03 : f32
    %cst_53 = arith.constant 1.000000e+00 : f32
    %156 = vector.broadcast %cst_52 : f32 to vector<8x256xf32>
    %157 = arith.maximumf %156, %155 : vector<8x256xf32>
    %158 = vector.broadcast %cst_53 : f32 to vector<8x256xf32>
    %159 = arith.minimumf %158, %157 : vector<8x256xf32>
    %160 = math.log %153 : vector<8x256xf32>
    %161 = math.log %159 : vector<8x256xf32>
    %162 = arith.subf %160, %161 : vector<8x256xf32>
    %163 = vector.extract_strided_slice %1 {offsets = [2, 0, 0], sizes = [1, 32, 8], strides = [1, 1, 1]} : vector<3x32x8xbf16> to vector<1x32x8xbf16>
    %164 = vector.shape_cast %163 : vector<1x32x8xbf16> to vector<32x8xbf16>
    %165 = arith.truncf %162 : vector<8x256xf32> to vector<8x256xbf16>
    %cst_54 = arith.constant dense<0.000000e+00> : vector<32x256xf32>
    %166 = tpu.matmul %164, %165, %cst_54 {dimension_numbers = #tpu.dot_dimension_numbers<[1], [0], [0], [1], [0, 0, 1, 1], [], []>} : vector<32x8xbf16>, vector<8x256xbf16>, vector<32x256xf32> -> vector<32x256xf32>
    %167 = arith.addf %142, %166 : vector<32x256xf32>
    %168 = vector.broadcast %3 : vector<32x1xf32> to vector<32x256xf32>
    %169 = arith.addf %167, %168 : vector<32x256xf32>
    %cst_55 = arith.constant 0.000000e+00 : f32
    %170 = vector.broadcast %cst_55 : f32 to vector<32x256xf32>
    %171 = arith.maximumf %169, %170 : vector<32x256xf32>
    %172 = arith.truncf %171 : vector<32x256xf32> to vector<32x256xbf16>
    %cst_56 = arith.constant dense<0.000000e+00> : vector<32x256xf32>
    %173 = tpu.matmul %2, %172, %cst_56 {dimension_numbers = #tpu.dot_dimension_numbers<[1], [0], [0], [1], [0, 0, 1, 1], [], []>} : vector<32x32xbf16>, vector<32x256xbf16>, vector<32x256xf32> -> vector<32x256xf32>
    %174 = vector.broadcast %4 : vector<32x1xf32> to vector<32x256xf32>
    %175 = arith.addf %173, %174 : vector<32x256xf32>
    %c1_57 = arith.constant 1 : index
    %c0_58 = arith.constant 0 : index
    %c0_59 = arith.constant 0 : index
    %176 = vector.load %arg8[%c1_57, %c0_58, %c0_59] : memref<4x32x256xf32, #tpu.memory_space<vmem>>, vector<1x32x256xf32>
    %177 = vector.shape_cast %176 : vector<1x32x256xf32> to vector<32x256xf32>
    %178 = vector.shape_cast %175 : vector<32x256xf32> to vector<1x32x256xf32>
    tpu.vector_store %arg8[%c1_57, %c0_58, %c0_59], %178 {strides = array<i32>} : memref<4x32x256xf32, #tpu.memory_space<vmem>>, vector<1x32x256xf32>,
    %c2 = arith.constant 2 : index
    %c0_60 = arith.constant 0 : index
    %c0_61 = arith.constant 0 : index
    %179 = vector.load %arg2[%c2, %c0_60, %c0_61] : memref<4x8x256xf32, #tpu.memory_space<vmem>>, vector<1x8x256xf32>
    %180 = vector.shape_cast %179 : vector<1x8x256xf32> to vector<8x256xf32>
    %181 = vector.extract_strided_slice %180 {offsets = [0, 0], sizes = [1, 256], strides = [1, 1]} : vector<8x256xf32> to vector<1x256xf32>
    %182 = vector.broadcast %0 : vector<8x1xf32> to vector<8x256xf32>
    %183 = vector.broadcast %181 : vector<1x256xf32> to vector<8x256xf32>
    %184 = arith.mulf %182, %183 : vector<8x256xf32>
    %185 = vector.extract_strided_slice %180 {offsets = [3, 0], sizes = [1, 256], strides = [1, 1]} : vector<8x256xf32> to vector<1x256xf32>
    %186 = vector.broadcast %185 : vector<1x256xf32> to vector<8x256xf32>
    %187 = arith.addf %184, %186 : vector<8x256xf32>
    %cst_62 = arith.constant 1.000000e-03 : f32
    %cst_63 = arith.constant 1.000000e+00 : f32
    %188 = vector.broadcast %cst_62 : f32 to vector<8x256xf32>
    %189 = arith.maximumf %188, %187 : vector<8x256xf32>
    %190 = vector.broadcast %cst_63 : f32 to vector<8x256xf32>
    %191 = arith.minimumf %190, %189 : vector<8x256xf32>
    %cst_64 = arith.constant 1.000000e+00 : f32
    %192 = vector.broadcast %cst_64 : f32 to vector<8x256xf32>
    %193 = arith.subf %192, %187 : vector<8x256xf32>
    %cst_65 = arith.constant 1.000000e-03 : f32
    %cst_66 = arith.constant 1.000000e+00 : f32
    %194 = vector.broadcast %cst_65 : f32 to vector<8x256xf32>
    %195 = arith.maximumf %194, %193 : vector<8x256xf32>
    %196 = vector.broadcast %cst_66 : f32 to vector<8x256xf32>
    %197 = arith.minimumf %196, %195 : vector<8x256xf32>
    %198 = math.log %191 : vector<8x256xf32>
    %199 = math.log %197 : vector<8x256xf32>
    %200 = arith.subf %198, %199 : vector<8x256xf32>
    %201 = vector.extract_strided_slice %1 {offsets = [0, 0, 0], sizes = [1, 32, 8], strides = [1, 1, 1]} : vector<3x32x8xbf16> to vector<1x32x8xbf16>
    %202 = vector.shape_cast %201 : vector<1x32x8xbf16> to vector<32x8xbf16>
    %203 = arith.truncf %200 : vector<8x256xf32> to vector<8x256xbf16>
    %cst_67 = arith.constant dense<0.000000e+00> : vector<32x256xf32>
    %204 = tpu.matmul %202, %203, %cst_67 {dimension_numbers = #tpu.dot_dimension_numbers<[1], [0], [0], [1], [0, 0, 1, 1], [], []>} : vector<32x8xbf16>, vector<8x256xbf16>, vector<32x256xf32> -> vector<32x256xf32>
    %205 = vector.extract_strided_slice %180 {offsets = [1, 0], sizes = [1, 256], strides = [1, 1]} : vector<8x256xf32> to vector<1x256xf32>
    %206 = vector.broadcast %0 : vector<8x1xf32> to vector<8x256xf32>
    %207 = vector.broadcast %205 : vector<1x256xf32> to vector<8x256xf32>
    %208 = arith.mulf %206, %207 : vector<8x256xf32>
    %209 = vector.extract_strided_slice %180 {offsets = [4, 0], sizes = [1, 256], strides = [1, 1]} : vector<8x256xf32> to vector<1x256xf32>
    %210 = vector.broadcast %209 : vector<1x256xf32> to vector<8x256xf32>
    %211 = arith.addf %208, %210 : vector<8x256xf32>
    %cst_68 = arith.constant 1.000000e-03 : f32
    %cst_69 = arith.constant 1.000000e+00 : f32
    %212 = vector.broadcast %cst_68 : f32 to vector<8x256xf32>
    %213 = arith.maximumf %212, %211 : vector<8x256xf32>
    %214 = vector.broadcast %cst_69 : f32 to vector<8x256xf32>
    %215 = arith.minimumf %214, %213 : vector<8x256xf32>
    %cst_70 = arith.constant 1.000000e+00 : f32
    %216 = vector.broadcast %cst_70 : f32 to vector<8x256xf32>
    %217 = arith.subf %216, %211 : vector<8x256xf32>
    %cst_71 = arith.constant 1.000000e-03 : f32
    %cst_72 = arith.constant 1.000000e+00 : f32
    %218 = vector.broadcast %cst_71 : f32 to vector<8x256xf32>
    %219 = arith.maximumf %218, %217 : vector<8x256xf32>
    %220 = vector.broadcast %cst_72 : f32 to vector<8x256xf32>
    %221 = arith.minimumf %220, %219 : vector<8x256xf32>
    %222 = math.log %215 : vector<8x256xf32>
    %223 = math.log %221 : vector<8x256xf32>
    %224 = arith.subf %222, %223 : vector<8x256xf32>
    %225 = vector.extract_strided_slice %1 {offsets = [1, 0, 0], sizes = [1, 32, 8], strides = [1, 1, 1]} : vector<3x32x8xbf16> to vector<1x32x8xbf16>
    %226 = vector.shape_cast %225 : vector<1x32x8xbf16> to vector<32x8xbf16>
    %227 = arith.truncf %224 : vector<8x256xf32> to vector<8x256xbf16>
    %cst_73 = arith.constant dense<0.000000e+00> : vector<32x256xf32>
    %228 = tpu.matmul %226, %227, %cst_73 {dimension_numbers = #tpu.dot_dimension_numbers<[1], [0], [0], [1], [0, 0, 1, 1], [], []>} : vector<32x8xbf16>, vector<8x256xbf16>, vector<32x256xf32> -> vector<32x256xf32>
    %229 = arith.addf %204, %228 : vector<32x256xf32>
    %230 = vector.extract_strided_slice %180 {offsets = [2, 0], sizes = [1, 256], strides = [1, 1]} : vector<8x256xf32> to vector<1x256xf32>
    %231 = vector.broadcast %0 : vector<8x1xf32> to vector<8x256xf32>
    %232 = vector.broadcast %230 : vector<1x256xf32> to vector<8x256xf32>
    %233 = arith.mulf %231, %232 : vector<8x256xf32>
    %234 = vector.extract_strided_slice %180 {offsets = [5, 0], sizes = [1, 256], strides = [1, 1]} : vector<8x256xf32> to vector<1x256xf32>
    %235 = vector.broadcast %234 : vector<1x256xf32> to vector<8x256xf32>
    %236 = arith.addf %233, %235 : vector<8x256xf32>
    %cst_74 = arith.constant 1.000000e-03 : f32
    %cst_75 = arith.constant 1.000000e+00 : f32
    %237 = vector.broadcast %cst_74 : f32 to vector<8x256xf32>
    %238 = arith.maximumf %237, %236 : vector<8x256xf32>
    %239 = vector.broadcast %cst_75 : f32 to vector<8x256xf32>
    %240 = arith.minimumf %239, %238 : vector<8x256xf32>
    %cst_76 = arith.constant 1.000000e+00 : f32
    %241 = vector.broadcast %cst_76 : f32 to vector<8x256xf32>
    %242 = arith.subf %241, %236 : vector<8x256xf32>
    %cst_77 = arith.constant 1.000000e-03 : f32
    %cst_78 = arith.constant 1.000000e+00 : f32
    %243 = vector.broadcast %cst_77 : f32 to vector<8x256xf32>
    %244 = arith.maximumf %243, %242 : vector<8x256xf32>
    %245 = vector.broadcast %cst_78 : f32 to vector<8x256xf32>
    %246 = arith.minimumf %245, %244 : vector<8x256xf32>
    %247 = math.log %240 : vector<8x256xf32>
    %248 = math.log %246 : vector<8x256xf32>
    %249 = arith.subf %247, %248 : vector<8x256xf32>
    %250 = vector.extract_strided_slice %1 {offsets = [2, 0, 0], sizes = [1, 32, 8], strides = [1, 1, 1]} : vector<3x32x8xbf16> to vector<1x32x8xbf16>
    %251 = vector.shape_cast %250 : vector<1x32x8xbf16> to vector<32x8xbf16>
    %252 = arith.truncf %249 : vector<8x256xf32> to vector<8x256xbf16>
    %cst_79 = arith.constant dense<0.000000e+00> : vector<32x256xf32>
    %253 = tpu.matmul %251, %252, %cst_79 {dimension_numbers = #tpu.dot_dimension_numbers<[1], [0], [0], [1], [0, 0, 1, 1], [], []>} : vector<32x8xbf16>, vector<8x256xbf16>, vector<32x256xf32> -> vector<32x256xf32>
    %254 = arith.addf %229, %253 : vector<32x256xf32>
    %255 = vector.broadcast %3 : vector<32x1xf32> to vector<32x256xf32>
    %256 = arith.addf %254, %255 : vector<32x256xf32>
    %cst_80 = arith.constant 0.000000e+00 : f32
    %257 = vector.broadcast %cst_80 : f32 to vector<32x256xf32>
    %258 = arith.maximumf %256, %257 : vector<32x256xf32>
    %259 = arith.truncf %258 : vector<32x256xf32> to vector<32x256xbf16>
    %cst_81 = arith.constant dense<0.000000e+00> : vector<32x256xf32>
    %260 = tpu.matmul %2, %259, %cst_81 {dimension_numbers = #tpu.dot_dimension_numbers<[1], [0], [0], [1], [0, 0, 1, 1], [], []>} : vector<32x32xbf16>, vector<32x256xbf16>, vector<32x256xf32> -> vector<32x256xf32>
    %261 = vector.broadcast %4 : vector<32x1xf32> to vector<32x256xf32>
    %262 = arith.addf %260, %261 : vector<32x256xf32>
    %c2_82 = arith.constant 2 : index
    %c0_83 = arith.constant 0 : index
    %c0_84 = arith.constant 0 : index
    %263 = vector.load %arg8[%c2_82, %c0_83, %c0_84] : memref<4x32x256xf32, #tpu.memory_space<vmem>>, vector<1x32x256xf32>
    %264 = vector.shape_cast %263 : vector<1x32x256xf32> to vector<32x256xf32>
    %265 = vector.shape_cast %262 : vector<32x256xf32> to vector<1x32x256xf32>
    tpu.vector_store %arg8[%c2_82, %c0_83, %c0_84], %265 {strides = array<i32>} : memref<4x32x256xf32, #tpu.memory_space<vmem>>, vector<1x32x256xf32>,
    %c3 = arith.constant 3 : index
    %c0_85 = arith.constant 0 : index
    %c0_86 = arith.constant 0 : index
    %266 = vector.load %arg2[%c3, %c0_85, %c0_86] : memref<4x8x256xf32, #tpu.memory_space<vmem>>, vector<1x8x256xf32>
    %267 = vector.shape_cast %266 : vector<1x8x256xf32> to vector<8x256xf32>
    %268 = vector.extract_strided_slice %267 {offsets = [0, 0], sizes = [1, 256], strides = [1, 1]} : vector<8x256xf32> to vector<1x256xf32>
    %269 = vector.broadcast %0 : vector<8x1xf32> to vector<8x256xf32>
    %270 = vector.broadcast %268 : vector<1x256xf32> to vector<8x256xf32>
    %271 = arith.mulf %269, %270 : vector<8x256xf32>
    %272 = vector.extract_strided_slice %267 {offsets = [3, 0], sizes = [1, 256], strides = [1, 1]} : vector<8x256xf32> to vector<1x256xf32>
    %273 = vector.broadcast %272 : vector<1x256xf32> to vector<8x256xf32>
    %274 = arith.addf %271, %273 : vector<8x256xf32>
    %cst_87 = arith.constant 1.000000e-03 : f32
    %cst_88 = arith.constant 1.000000e+00 : f32
    %275 = vector.broadcast %cst_87 : f32 to vector<8x256xf32>
    %276 = arith.maximumf %275, %274 : vector<8x256xf32>
    %277 = vector.broadcast %cst_88 : f32 to vector<8x256xf32>
    %278 = arith.minimumf %277, %276 : vector<8x256xf32>
    %cst_89 = arith.constant 1.000000e+00 : f32
    %279 = vector.broadcast %cst_89 : f32 to vector<8x256xf32>
    %280 = arith.subf %279, %274 : vector<8x256xf32>
    %cst_90 = arith.constant 1.000000e-03 : f32
    %cst_91 = arith.constant 1.000000e+00 : f32
    %281 = vector.broadcast %cst_90 : f32 to vector<8x256xf32>
    %282 = arith.maximumf %281, %280 : vector<8x256xf32>
    %283 = vector.broadcast %cst_91 : f32 to vector<8x256xf32>
    %284 = arith.minimumf %283, %282 : vector<8x256xf32>
    %285 = math.log %278 : vector<8x256xf32>
    %286 = math.log %284 : vector<8x256xf32>
    %287 = arith.subf %285, %286 : vector<8x256xf32>
    %288 = vector.extract_strided_slice %1 {offsets = [0, 0, 0], sizes = [1, 32, 8], strides = [1, 1, 1]} : vector<3x32x8xbf16> to vector<1x32x8xbf16>
    %289 = vector.shape_cast %288 : vector<1x32x8xbf16> to vector<32x8xbf16>
    %290 = arith.truncf %287 : vector<8x256xf32> to vector<8x256xbf16>
    %cst_92 = arith.constant dense<0.000000e+00> : vector<32x256xf32>
    %291 = tpu.matmul %289, %290, %cst_92 {dimension_numbers = #tpu.dot_dimension_numbers<[1], [0], [0], [1], [0, 0, 1, 1], [], []>} : vector<32x8xbf16>, vector<8x256xbf16>, vector<32x256xf32> -> vector<32x256xf32>
    %292 = vector.extract_strided_slice %267 {offsets = [1, 0], sizes = [1, 256], strides = [1, 1]} : vector<8x256xf32> to vector<1x256xf32>
    %293 = vector.broadcast %0 : vector<8x1xf32> to vector<8x256xf32>
    %294 = vector.broadcast %292 : vector<1x256xf32> to vector<8x256xf32>
    %295 = arith.mulf %293, %294 : vector<8x256xf32>
    %296 = vector.extract_strided_slice %267 {offsets = [4, 0], sizes = [1, 256], strides = [1, 1]} : vector<8x256xf32> to vector<1x256xf32>
    %297 = vector.broadcast %296 : vector<1x256xf32> to vector<8x256xf32>
    %298 = arith.addf %295, %297 : vector<8x256xf32>
    %cst_93 = arith.constant 1.000000e-03 : f32
    %cst_94 = arith.constant 1.000000e+00 : f32
    %299 = vector.broadcast %cst_93 : f32 to vector<8x256xf32>
    %300 = arith.maximumf %299, %298 : vector<8x256xf32>
    %301 = vector.broadcast %cst_94 : f32 to vector<8x256xf32>
    %302 = arith.minimumf %301, %300 : vector<8x256xf32>
    %cst_95 = arith.constant 1.000000e+00 : f32
    %303 = vector.broadcast %cst_95 : f32 to vector<8x256xf32>
    %304 = arith.subf %303, %298 : vector<8x256xf32>
    %cst_96 = arith.constant 1.000000e-03 : f32
    %cst_97 = arith.constant 1.000000e+00 : f32
    %305 = vector.broadcast %cst_96 : f32 to vector<8x256xf32>
    %306 = arith.maximumf %305, %304 : vector<8x256xf32>
    %307 = vector.broadcast %cst_97 : f32 to vector<8x256xf32>
    %308 = arith.minimumf %307, %306 : vector<8x256xf32>
    %309 = math.log %302 : vector<8x256xf32>
    %310 = math.log %308 : vector<8x256xf32>
    %311 = arith.subf %309, %310 : vector<8x256xf32>
    %312 = vector.extract_strided_slice %1 {offsets = [1, 0, 0], sizes = [1, 32, 8], strides = [1, 1, 1]} : vector<3x32x8xbf16> to vector<1x32x8xbf16>
    %313 = vector.shape_cast %312 : vector<1x32x8xbf16> to vector<32x8xbf16>
    %314 = arith.truncf %311 : vector<8x256xf32> to vector<8x256xbf16>
    %cst_98 = arith.constant dense<0.000000e+00> : vector<32x256xf32>
    %315 = tpu.matmul %313, %314, %cst_98 {dimension_numbers = #tpu.dot_dimension_numbers<[1], [0], [0], [1], [0, 0, 1, 1], [], []>} : vector<32x8xbf16>, vector<8x256xbf16>, vector<32x256xf32> -> vector<32x256xf32>
    %316 = arith.addf %291, %315 : vector<32x256xf32>
    %317 = vector.extract_strided_slice %267 {offsets = [2, 0], sizes = [1, 256], strides = [1, 1]} : vector<8x256xf32> to vector<1x256xf32>
    %318 = vector.broadcast %0 : vector<8x1xf32> to vector<8x256xf32>
    %319 = vector.broadcast %317 : vector<1x256xf32> to vector<8x256xf32>
    %320 = arith.mulf %318, %319 : vector<8x256xf32>
    %321 = vector.extract_strided_slice %267 {offsets = [5, 0], sizes = [1, 256], strides = [1, 1]} : vector<8x256xf32> to vector<1x256xf32>
    %322 = vector.broadcast %321 : vector<1x256xf32> to vector<8x256xf32>
    %323 = arith.addf %320, %322 : vector<8x256xf32>
    %cst_99 = arith.constant 1.000000e-03 : f32
    %cst_100 = arith.constant 1.000000e+00 : f32
    %324 = vector.broadcast %cst_99 : f32 to vector<8x256xf32>
    %325 = arith.maximumf %324, %323 : vector<8x256xf32>
    %326 = vector.broadcast %cst_100 : f32 to vector<8x256xf32>
    %327 = arith.minimumf %326, %325 : vector<8x256xf32>
    %cst_101 = arith.constant 1.000000e+00 : f32
    %328 = vector.broadcast %cst_101 : f32 to vector<8x256xf32>
    %329 = arith.subf %328, %323 : vector<8x256xf32>
    %cst_102 = arith.constant 1.000000e-03 : f32
    %cst_103 = arith.constant 1.000000e+00 : f32
    %330 = vector.broadcast %cst_102 : f32 to vector<8x256xf32>
    %331 = arith.maximumf %330, %329 : vector<8x256xf32>
    %332 = vector.broadcast %cst_103 : f32 to vector<8x256xf32>
    %333 = arith.minimumf %332, %331 : vector<8x256xf32>
    %334 = math.log %327 : vector<8x256xf32>
    %335 = math.log %333 : vector<8x256xf32>
    %336 = arith.subf %334, %335 : vector<8x256xf32>
    %337 = vector.extract_strided_slice %1 {offsets = [2, 0, 0], sizes = [1, 32, 8], strides = [1, 1, 1]} : vector<3x32x8xbf16> to vector<1x32x8xbf16>
    %338 = vector.shape_cast %337 : vector<1x32x8xbf16> to vector<32x8xbf16>
    %339 = arith.truncf %336 : vector<8x256xf32> to vector<8x256xbf16>
    %cst_104 = arith.constant dense<0.000000e+00> : vector<32x256xf32>
    %340 = tpu.matmul %338, %339, %cst_104 {dimension_numbers = #tpu.dot_dimension_numbers<[1], [0], [0], [1], [0, 0, 1, 1], [], []>} : vector<32x8xbf16>, vector<8x256xbf16>, vector<32x256xf32> -> vector<32x256xf32>
    %341 = arith.addf %316, %340 : vector<32x256xf32>
    %342 = vector.broadcast %3 : vector<32x1xf32> to vector<32x256xf32>
    %343 = arith.addf %341, %342 : vector<32x256xf32>
    %cst_105 = arith.constant 0.000000e+00 : f32
    %344 = vector.broadcast %cst_105 : f32 to vector<32x256xf32>
    %345 = arith.maximumf %343, %344 : vector<32x256xf32>
    %346 = arith.truncf %345 : vector<32x256xf32> to vector<32x256xbf16>
    %cst_106 = arith.constant dense<0.000000e+00> : vector<32x256xf32>
    %347 = tpu.matmul %2, %346, %cst_106 {dimension_numbers = #tpu.dot_dimension_numbers<[1], [0], [0], [1], [0, 0, 1, 1], [], []>} : vector<32x32xbf16>, vector<32x256xbf16>, vector<32x256xf32> -> vector<32x256xf32>
    %348 = vector.broadcast %4 : vector<32x1xf32> to vector<32x256xf32>
    %349 = arith.addf %347, %348 : vector<32x256xf32>
    %c3_107 = arith.constant 3 : index
    %c0_108 = arith.constant 0 : index
    %c0_109 = arith.constant 0 : index
    %350 = vector.load %arg8[%c3_107, %c0_108, %c0_109] : memref<4x32x256xf32, #tpu.memory_space<vmem>>, vector<1x32x256xf32>
    %351 = vector.shape_cast %350 : vector<1x32x256xf32> to vector<32x256xf32>
    %352 = vector.shape_cast %349 : vector<32x256xf32> to vector<1x32x256xf32>
    tpu.vector_store %arg8[%c3_107, %c0_108, %c0_109], %352 {strides = array<i32>} : memref<4x32x256xf32, #tpu.memory_space<vmem>>, vector<1x32x256xf32>,
    return
  }
  func.func @transform_0(%arg0: i32, %arg1: i32) -> (i32, i32, i32) {
    %c0_i32 = arith.constant 0 : i32
    %c0_i32_0 = arith.constant 0 : i32
    return %arg0, %c0_i32, %arg1 : i32, i32, i32
  }
  func.func @transform_1(%arg0: i32, %arg1: i32) -> (i32, i32) {
    %c0_i32 = arith.constant 0 : i32
    %c0_i32_0 = arith.constant 0 : i32
    %c0_i32_1 = arith.constant 0 : i32
    return %c0_i32, %c0_i32_0 : i32, i32
  }
  func.func @transform_2(%arg0: i32, %arg1: i32) -> (i32, i32, i32) {
    %c0_i32 = arith.constant 0 : i32
    %c0_i32_0 = arith.constant 0 : i32
    %c0_i32_1 = arith.constant 0 : i32
    %c0_i32_2 = arith.constant 0 : i32
    return %c0_i32, %c0_i32_0, %c0_i32_1 : i32, i32, i32
  }
  func.func @transform_3(%arg0: i32, %arg1: i32) -> (i32, i32) {
    %c0_i32 = arith.constant 0 : i32
    %c0_i32_0 = arith.constant 0 : i32
    %c0_i32_1 = arith.constant 0 : i32
    return %c0_i32, %c0_i32_0 : i32, i32
  }
  func.func @transform_4(%arg0: i32, %arg1: i32) -> (i32, i32) {
    %c0_i32 = arith.constant 0 : i32
    %c0_i32_0 = arith.constant 0 : i32
    %c0_i32_1 = arith.constant 0 : i32
    return %c0_i32, %c0_i32_0 : i32, i32
  }
  func.func @transform_5(%arg0: i32, %arg1: i32) -> (i32, i32) {
    %c0_i32 = arith.constant 0 : i32
    %c0_i32_0 = arith.constant 0 : i32
    %c0_i32_1 = arith.constant 0 : i32
    return %c0_i32, %c0_i32_0 : i32, i32
  }
  func.func @transform_6(%arg0: i32, %arg1: i32) -> (i32, i32, i32) {
    %c0_i32 = arith.constant 0 : i32
    %c0_i32_0 = arith.constant 0 : i32
    return %arg0, %c0_i32, %arg1 : i32, i32, i32
  }
}

</mosaic_0001>

<bundles_post_ra>
// kernel: tpu_custom_call.1
= control target key start
LH: loop header
LB: loop body
LE: loop exit
PB: predicated region body
PF: predicated region fallthrough
CT: control target
= control target key end

     0   :  { %v1619_v1 = vmov 0   ;;  %s2115_s0 = inlined_call_operand.vmem [shape: f32[4,8,256], index: 0, kind: input, shape index: {}]   ;;  %s2116_s1 = inlined_call_operand.vmem [shape: f32[8,1], index: 1, kind: input, shape index: {}]   ;;  %s2117_s2 = inlined_call_operand.vmem [shape: bf16[3,32,8], index: 2, kind: input, shape index: {}]   ;;  %s2118_s3 = inlined_call_operand.vmem [shape: f32[32,1], index: 3, kind: input, shape index: {}]   ;;  %s2119_s4 = inlined_call_operand.vmem [shape: bf16[32,32], index: 4, kind: input, shape index: {}]   ;;  %s2120_s5 = inlined_call_operand.vmem [shape: f32[32,1], index: 5, kind: input, shape index: {}]   ;;  %s2121_s6 = inlined_call_operand.hbm [shape: f32[4,32,256], index: 6, kind: output, shape index: {}]  }
   0x1   :  { %v25_v0 = vld [vmem:[%s2116_s1] sm:$0xff]  ;;  %1492 = vset.pattern.permute.xlu0 %v1619_v1  ;;  %1493 = vset.pattern.permute.xlu1 %v1619_v1 }
   0x2   :  { %11 = vsyncpa [#allocation3], 0  ;;  %54 = vperm.xlu0 %1492, %v25_v0   ;;  %1494 = vset.pattern.permute.xlu2 %v1619_v1  ;;  %v44_v2 = vld [vmem:[%s2118_s3 + $0x10] sm:$0xff]  ;;  %v47_v3 = vld [vmem:[%s2120_s5 + $0x8] sm:$0xff]  ;;  %vm134_vm0 = vcmask 1043456   ;;  %vm127_vm1 = vcmask 64512  }
   0x3   :  { %v50_v4 = vld [vmem:[%s2115_s0] sm:$0xff]  ;;  %v51_v5 = vld [vmem:[%s2115_s0 + $0x8] sm:$0xff]  ;;  %v1676_v6 = vld [vmem:[%s2115_s0 + $0x10] sm:$0xff]  ;;  %vm407_vm2 = vcmask 261120   ;;  %s1366_s24 = sshll.u32 %s2121_s6, 4  ;;  %s1621_s25 = smov 256   ;;  %s1367_s24 = int_to_ptr.hbm [resolvable:$true] %s1366_s24 }
   0x4   :  { %v87_v7 = vperm.slane %v50_v4, 1  ;;  %v88_v8 = vperm.slane %v51_v5, 1  ;;  %v57_v9 = vperm.slane %v50_v4, 0  ;;  %v58_v10 = vperm.slane %v51_v5, 0  ;;  %v1681_v11 = vld [vmem:[%s2115_s0 + $0x18] sm:$0xff]  ;;  %s1622_s26 = smov 16  }
   0x5   :  { %v91_v12 = vperm.slane %v50_v4, 4  ;;  %v239_v13 = vperm.slane %v50_v4, 2  ;;  %v240_v14 = vperm.slane %v51_v5, 2  ;;  %v493_v15 = vperm.slane %v1676_v6, 1 }
   0x6   :  { %v92_v16 = vperm.slane %v51_v5, 4  ;;  %v61_v17 = vperm.slane %v50_v4, 3  ;;  %v62_v18 = vperm.slane %v51_v5, 3  ;;  %v243_v19 = vperm.slane %v50_v4, 5 }
   0x7   :  { %v244_v21 = vperm.slane %v51_v5, 5  ;;  %v497_v22 = vperm.slane %v1676_v6, 4  ;;  %v494_v23 = vperm.slane %v1681_v11, 1  ;;  %v498_v24 = vperm.slane %v1681_v11, 4 }
   0x8   :  { %v611_v32 = vperm.slane %v1676_v6, 2  ;;  %v615_v40 = vperm.slane %v1676_v6, 5 }
   0xa   :  { %349 = vperm.xlu0 %1492, %v44_v2  }
  0x12   :  { %384 = vperm.xlu0 %1492, %v47_v3  }
  0x74   :  { %v1684_v20 = vpop.permute.xlu0 %54 }
  0x75   :  { %v89_v25 = vmul.f32 %v87_v7, %v1684_v20  ;;  %v90_v26 = vmul.f32 %v88_v8, %v1684_v20  ;;  %v59_v27 = vmul.f32 %v57_v9, %v1684_v20  ;;  %v60_v28 = vmul.f32 %v58_v10, %v1684_v20 }
  0x76   :  { %v241_v29 = vmul.f32 %v239_v13, %v1684_v20  ;;  %v242_v30 = vmul.f32 %v240_v14, %v1684_v20  ;;  %v495_v31 = vmul.f32 %v493_v15, %v1684_v20  ;;  %v496_v56 = vmul.f32 %v494_v23, %v1684_v20 }
  0x77   :  { %v93_v33 = vadd.f32 %v91_v12, %v89_v25  ;;  %v94_v34 = vadd.f32 %v92_v16, %v90_v26  ;;  %v63_v35 = vadd.f32 %v61_v17, %v59_v27  ;;  %v64_v36 = vadd.f32 %v62_v18, %v60_v28 }
  0x78   :  { %v245_v37 = vadd.f32 %v243_v19, %v241_v29  ;;  %v246_v38 = vadd.f32 %v244_v21, %v242_v30  ;;  %v499_v39 = vadd.f32 %v497_v22, %v495_v31  ;;  %v500_v8 = vadd.f32 %v498_v24, %v496_v56 }
  0x79   :  { %v95_v41 = vmax.f32 %v93_v33, 0.001  ;;  %v99_v42 = vsub.f32 1.0, %v93_v33  ;;  %v96_v43 = vmax.f32 %v94_v34, 0.001  ;;  %v100_v44 = vsub.f32 1.0, %v94_v34 }
  0x7a   :  { %v65_v45 = vmax.f32 %v63_v35, 0.001  ;;  %v69_v46 = vsub.f32 1.0, %v63_v35  ;;  %v66_v47 = vmax.f32 %v64_v36, 0.001  ;;  %v70_v48 = vsub.f32 1.0, %v64_v36 }
  0x7b   :  { %v97_v49 = vmin.f32 %v95_v41, 1.0  ;;  %v101_v50 = vmax.f32 %v99_v42, 0.001  ;;  %v98_v51 = vmin.f32 %v96_v43, 1.0  ;;  %v102_v52 = vmax.f32 %v100_v44, 0.001 }
  0x7c   :  { %v67_v53 = vmin.f32 %v65_v45, 1.0  ;;  %v71_v54 = vmax.f32 %v69_v46, 0.001  ;;  %v72_v55 = vmax.f32 %v70_v48, 0.001  ;;  %v68_v61 = vmin.f32 %v66_v47, 1.0 }
  0x7d   :  { %v103_v57 = vmin.f32 %v101_v50, 1.0  ;;  %1495 = vlog2.f32 %v97_v49  ;;  %v104_v58 = vmin.f32 %v102_v52, 1.0  ;;  %v247_v59 = vmax.f32 %v245_v37, 0.001  ;;  %v1711_v52 = vld [vmem:[%s2117_s2 + $0x10] sm:$0xff] }
  0x7e   :  { %1497 = vlog2.f32 %v98_v51  ;;  %v73_v60 = vmin.f32 %v71_v54, 1.0  ;;  %v251_v62 = vsub.f32 1.0, %v245_v37  ;;  %v74_v63 = vmin.f32 %v72_v55, 1.0 }
  0x7f   :  { %1499 = vlog2.f32 %v103_v57  ;;  %v248_v0 = vmax.f32 %v246_v38, 0.001  ;;  %v252_v1 = vsub.f32 1.0, %v246_v38  ;;  %v249_v2 = vmin.f32 %v247_v59, 1.0 }
  0x80   :  { %1501 = vlog2.f32 %v104_v58  ;;  %v253_v3 = vmax.f32 %v251_v62, 0.001  ;;  %v505_v4 = vsub.f32 1.0, %v499_v39  ;;  %v501_v7 = vmax.f32 %v499_v39, 0.001 }
  0x81   :  { %1503 = vlog2.f32 %v67_v53  ;;  %v254_v5 = vmax.f32 %v252_v1, 0.001  ;;  %v612_v12 = vperm.slane %v1681_v11, 2  ;;  %v250_v14 = vmin.f32 %v248_v0, 1.0 }
  0x82   :  { %1505 = vlog2.f32 %v73_v60  ;;  %v255_v9 = vmin.f32 %v253_v3, 1.0  ;;  %v507_v10 = vmax.f32 %v505_v4, 0.001  ;;  %v502_v15 = vmax.f32 %v500_v8, 0.001  ;;  %v1719_v3 = vld [vmem:[%s2117_s2] sm:$0xff] }
  0x83   :  { %v1496_v13 = vpop.eup %1495  ;;  %1507 = vlog2.f32 %v68_v61  ;;  %v506_v16 = vsub.f32 1.0, %v500_v8  ;;  %v256_v18 = vmin.f32 %v254_v5, 1.0  ;;  %v613_v19 = vmul.f32 %v611_v32, %v1684_v20 }
  0x84   :  { %v1498_v17 = vpop.eup %1497  ;;  %1509 = vlog2.f32 %v74_v63  ;;  %v616_v21 = vperm.slane %v1681_v11, 5  ;;  %v503_v23 = vmin.f32 %v501_v7, 1.0  ;;  %v106_v26 = vmul.f32 0.6931472, %v1496_v13 }
  0x85   :  { %v1500_v22 = vpop.eup %1499  ;;  %1511 = vlog2.f32 %v249_v2  ;;  %v508_v24 = vmax.f32 %v506_v16, 0.001  ;;  %v509_v28 = vmin.f32 %v507_v10, 1.0  ;;  %v108_v30 = vmul.f32 0.6931472, %v1498_v17  ;;  %v45_v17 = vld [vmem:[%s2118_s3 + $0x18] sm:$0xff] }
  0x86   :  { %v1502_v25 = vpop.eup %1501  ;;  %v110_v27 = vmul.f32 0.6931472, %v1500_v22  ;;  %1513 = vlog2.f32 %v255_v9  ;;  %v504_v33 = vmin.f32 %v502_v15, 1.0  ;;  %v1704_v36 = vadd.f32 %v615_v40, %v613_v19  ;;  %354 = vperm.xlu1 %1493, %v45_v17  }
  0x87   :  { %v1504_v29 = vpop.eup %1503  ;;  %v112_v31 = vmul.f32 0.6931472, %v1502_v25  ;;  %1515 = vlog2.f32 %v250_v14  ;;  %v510_v32 = vmin.f32 %v508_v24, 1.0  ;;  %v614_v45 = vmul.f32 %v612_v12, %v1684_v20 }
  0x88   :  { %v1506_v34 = vpop.eup %1505  ;;  %v113_v35 = vsub.f32 %v106_v26, %v110_v27  ;;  %1517 = vlog2.f32 %v256_v18  ;;  %v76_v39 = vmul.f32 0.6931472, %v1504_v29  ;;  %v623_v60 = vsub.f32 1.0, %v1704_v36 }
  0x89   :  { %v1508_v37 = vpop.eup %1507  ;;  %v114_v38 = vsub.f32 %v108_v30, %v112_v31  ;;  %v80_v41 = vmul.f32 0.6931472, %v1506_v34  ;;  %1519 = vlog2.f32 %v503_v23  ;;  %v618_v61 = vadd.f32 %v616_v21, %v614_v45  ;;  %v42_v34 = vld [vmem:[%s2118_s3] sm:$0xff] }
  0x8a   :  { %v1510_v42 = vpop.eup %1509  ;;  %v115_v43 = vpack.c.bf16 %v113_v35, %v113_v35  ;;  %v78_v44 = vmul.f32 0.6931472, %v1508_v37  ;;  %1521 = vlog2.f32 %v509_v28  ;;  %v625_v16 = vmax.f32 %v623_v60, 0.001 }
  0x8b   :  { %v1512_v46 = vpop.eup %1511  ;;  %v116_v47 = vpack.c.bf16 %v114_v38, %v114_v38  ;;  %v83_v48 = vsub.f32 %v76_v39, %v80_v41  ;;  %v82_v49 = vmul.f32 0.6931472, %v1510_v42  ;;  %1523 = vlog2.f32 %v504_v33  ;;  %v1749_v38 = vld [vmem:[%s2117_s2 + $0x8] sm:$0xff]  ;;  %v1756_v39 = vld [vmem:[%s2115_s0 + $0x20] sm:$0xff] }
  0x8c   :  { %v1514_v50 = vpop.eup %1513  ;;  %v136_v40 = vsel %vm134_vm0, %v115_v43, 0  ;;  %v258_v51 = vmul.f32 0.6931472, %v1512_v46  ;;  %1525 = vlog2.f32 %v510_v32  ;;  %v624_v7 = vsub.f32 1.0, %v618_v61  ;;  %v1763_v42 = vld [vmem:[%s2115_s0 + $0x28] sm:$0xff] }
  0x8d   :  { %v1516_v53 = vpop.eup %1515  ;;  %148 = vmatpush.bf16.msra.mxu0 %v136_v40  ;;  %v139_v54 = vsel %vm134_vm0, %v116_v47, 0  ;;  %v85_v55 = vpack.c.bf16 %v83_v48, %v83_v48  ;;  %v84_v56 = vsub.f32 %v78_v44, %v82_v49  ;;  %v262_v57 = vmul.f32 0.6931472, %v1514_v50 }
  0x8e   :  { %v1518_v58 = vpop.eup %1517  ;;  %167 = vmatpush.bf16.msra.mxu1 %v139_v54  ;;  %v260_v59 = vmul.f32 0.6931472, %v1516_v53  ;;  %v626_v23 = vmax.f32 %v624_v7, 0.001  ;;  %v619_v27 = vmax.f32 %v1704_v36, 0.001  ;;  %339 = vperm.xlu1 %1493, %v42_v34  }
  0x8f   :  { %v1520_v62 = vpop.eup %1519  ;;  %v196_v63 = vsel %vm134_vm0, %v85_v55, 0  ;;  %v86_v0 = vpack.c.bf16 %v84_v56, %v84_v56  ;;  %v265_v1 = vsub.f32 %v258_v51, %v262_v57  ;;  %v264_v2 = vmul.f32 0.6931472, %v1518_v58  ;;  %v1744_v36 = vld [vmem:[%s2117_s2 + $0x18] sm:$0xff] }
  0x90   :  { %v1522_v4 = vpop.eup %1521  ;;  %208 = vmatpush.bf16.msra.mxu2 %v196_v63  ;;  %1386 = vmatmul.msk.bf16.vlgmr.msra.gmra.mxu0 %vm127_vm1, %v1711_v52  ;;  %v512_v5 = vmul.f32 0.6931472, %v1520_v62  ;;  %v620_v28 = vmax.f32 %v618_v61, 0.001  ;;  %v627_v31 = vmin.f32 %v625_v16, 1.0  ;;  %v628_v33 = vmin.f32 %v626_v23, 1.0 }
  0x91   :  { %v1524_v8 = vpop.eup %1523  ;;  %v199_v9 = vsel %vm134_vm0, %v86_v0, 0  ;;  %v267_v10 = vpack.c.bf16 %v265_v1, %v265_v1  ;;  %v266_v12 = vsub.f32 %v260_v59, %v264_v2  ;;  %1388 = vmatmul.msk.bf16.vlgmr.msra.gmra.mxu1 %vm127_vm1, %v1711_v52  ;;  %v516_v13 = vmul.f32 0.6931472, %v1522_v4  ;;  %v1778_v59 = vld [vmem:[%s2117_s2 + $0x20] sm:$0xff]  ;;  %v48_v4 = vld [vmem:[%s2120_s5 + $0x10] sm:$0xff]  ;;  %v1795_v16 = vld [vmem:[%s2117_s2 + $0x28] sm:$0xff] }
  0x92   :  { %v1526_v14 = vpop.eup %1525  ;;  %227 = vmatpush.bf16.msra.mxu3 %v199_v9  ;;  %v514_v15 = vmul.f32 0.6931472, %v1524_v8  ;;  %v621_v32 = vmin.f32 %v619_v27, 1.0  ;;  %v622_v37 = vmin.f32 %v620_v28, 1.0  ;;  %1527 = vlog2.f32 %v627_v31 }
  0x93   :  { %v286_v18 = vsel %vm134_vm0, %v267_v10, 0  ;;  %v268_v19 = vpack.c.bf16 %v266_v12, %v266_v12  ;;  %1398 = vmatmul.msk.bf16.vlgmr.msra.gmra.mxu2 %vm127_vm1, %v1719_v3  ;;  %v519_v21 = vsub.f32 %v512_v5, %v516_v13  ;;  %v518_v22 = vmul.f32 0.6931472, %v1526_v14  ;;  %v43_v5 = vld [vmem:[%s2118_s3 + $0x8] sm:$0xff] }
  0x94   :  { %298 = vmatpush.bf16.msrb.mxu0 %v286_v18  ;;  %1529 = vlog2.f32 %v628_v33  ;;  %v793_v45 = vperm.slane %v1756_v39, 1  ;;  %v794_v48 = vperm.slane %v1763_v42, 1  ;;  %v797_v53 = vperm.slane %v1756_v39, 4  ;;  %344 = vperm.xlu2 %1494, %v43_v5   ;;  %v46_v18 = vld [vmem:[%s2120_s5] sm:$0xff] }
  0x95   :  { %v289_v24 = vsel %vm134_vm0, %v268_v19, 0  ;;  %1400 = vmatmul.msk.bf16.vlgmr.msra.gmra.mxu3 %vm127_vm1, %v1719_v3  ;;  %v521_v25 = vpack.c.bf16 %v519_v21, %v519_v21  ;;  %v520_v26 = vsub.f32 %v514_v15, %v518_v22  ;;  %1531 = vlog2.f32 %v621_v32 }
  0x96   :  { %317 = vmatpush.bf16.msrb.mxu1 %v289_v24  ;;  %1533 = vlog2.f32 %v622_v37  ;;  %v795_v51 = vmul.f32 %v793_v45, %v1684_v20  ;;  %v796_v55 = vmul.f32 %v794_v48, %v1684_v20  ;;  %v798_v56 = vperm.slane %v1763_v42, 4  ;;  %389 = vperm.xlu1 %1493, %v48_v4   ;;  %v49_v48 = vld [vmem:[%s2120_s5 + $0x18] sm:$0xff] }
  0x97   :  { %v524_v29 = vsel %vm134_vm0, %v521_v25, 0  ;;  %v522_v30 = vpack.c.bf16 %v520_v26, %v520_v26  ;;  %v911_v22 = vperm.slane %v1756_v39, 2  ;;  %v912_v25 = vperm.slane %v1763_v42, 2 }
  0x98   :  { %536 = vmatpush.bf16.msra.mxu0 %v524_v29  ;;  %v1528_v41 = vpop.eup %1527  ;;  %v799_v58 = vadd.f32 %v797_v53, %v795_v51  ;;  %v800_v61 = vadd.f32 %v798_v56, %v796_v55  ;;  %v916_v34 = vperm.slane %v1763_v42, 5 }
  0x99   :  { %v527_v35 = vsel %vm134_vm0, %v522_v30, 0  ;;  %v634_v47 = vmul.f32 0.6931472, %v1528_v41  ;;  %v913_v29 = vmul.f32 %v911_v22, %v1684_v20  ;;  %v915_v30 = vperm.slane %v1756_v39, 5 }
  0x9a   :  { %555 = vmatpush.bf16.msra.mxu1 %v527_v35  ;;  %v1530_v43 = vpop.eup %1529  ;;  %v805_v63 = vsub.f32 1.0, %v799_v58  ;;  %v806_v1 = vsub.f32 1.0, %v800_v61  ;;  %v801_v9 = vmax.f32 %v799_v58, 0.001  ;;  %v802_v10 = vmax.f32 %v800_v61, 0.001 }
  0x9b   :  { %v1532_v44 = vpop.eup %1531  ;;  %v636_v49 = vmul.f32 0.6931472, %v1530_v43  ;;  %v914_v33 = vmul.f32 %v912_v25, %v1684_v20  ;;  %v917_v32 = vadd.f32 %v915_v30, %v913_v29 }
  0x9c   :  { %v1534_v46 = vpop.eup %1533  ;;  %v630_v50 = vmul.f32 0.6931472, %v1532_v44  ;;  %v807_v7 = vmax.f32 %v805_v63, 0.001  ;;  %v808_v8 = vmax.f32 %v806_v1, 0.001  ;;  %379 = vperm.xlu2 %1494, %v46_v18  }
  0x9d   :  { %v632_v40 = vmul.f32 0.6931472, %v1534_v46  ;;  %v803_v14 = vmin.f32 %v801_v9, 1.0  ;;  %v804_v15 = vmin.f32 %v802_v10, 1.0  ;;  %v918_v41 = vadd.f32 %v916_v34, %v914_v33 }
  0x9e   :  { %v637_v54 = vsub.f32 %v630_v50, %v634_v47  ;;  %v809_v12 = vmin.f32 %v807_v7, 1.0  ;;  %v810_v13 = vmin.f32 %v808_v8, 1.0  ;;  %v923_v44 = vsub.f32 1.0, %v917_v32 }
  0x9f   :  { %v638_v57 = vsub.f32 %v632_v40, %v636_v49  ;;  %v924_v46 = vsub.f32 1.0, %v918_v41  ;;  %v919_v40 = vmax.f32 %v917_v32, 0.001  ;;  %v920_v51 = vmax.f32 %v918_v41, 0.001 }
  0xa0   :  { %1387 = vmatmul.msk.bf16.gmra.mxu0 %vm127_vm1, %v1744_v36  ;;  %v639_v60 = vpack.c.bf16 %v637_v54, %v637_v54  ;;  %1535 = vlog2.f32 %v809_v12  ;;  %v925_v49 = vmax.f32 %v923_v44, 0.001 }
  0xa1   :  { %1389 = vmatmul.msk.bf16.gmra.mxu1 %vm127_vm1, %v1744_v36  ;;  %v640_v62 = vpack.c.bf16 %v638_v57, %v638_v57  ;;  %1537 = vlog2.f32 %v810_v13  ;;  %v926_v50 = vmax.f32 %v924_v46, 0.001  ;;  %v921_v55 = vmin.f32 %v919_v40, 1.0  ;;  %v1824_v57 = vld [vmem:[%s2115_s0 + $0x30] sm:$0xff] }
  0xa2   :  { %v642_v0 = vsel %vm134_vm0, %v639_v60, 0  ;;  %1539 = vlog2.f32 %v803_v14  ;;  %v927_v53 = vmin.f32 %v925_v49, 1.0  ;;  %v922_v56 = vmin.f32 %v920_v51, 1.0  ;;  %v1831_v60 = vld [vmem:[%s2115_s0 + $0x38] sm:$0xff] }
  0xa3   :  { %1399 = vmatmul.msk.bf16.gmra.mxu2 %vm127_vm1, %v1749_v38  ;;  %v645_v2 = vsel %vm134_vm0, %v640_v62, 0  ;;  %1541 = vlog2.f32 %v804_v15  ;;  %v928_v54 = vmin.f32 %v926_v50, 1.0  ;;  %v1093_v63 = vperm.slane %v1824_v57, 1 }
  0xa4   :  { %394 = vperm.xlu2 %1494, %v49_v48   ;;  %1543 = vlog2.f32 %v927_v53  ;;  %v1097_v9 = vperm.slane %v1824_v57, 4  ;;  %v1098_v13 = vperm.slane %v1831_v60, 4  ;;  %v1212_v44 = vperm.slane %v1831_v60, 2 }
  0xa5   :  { %1401 = vmatmul.msk.bf16.gmra.mxu3 %vm127_vm1, %v1749_v38  ;;  %1545 = vlog2.f32 %v928_v54  ;;  %v1095_v8 = vmul.f32 %v1093_v63, %v1684_v20  ;;  %v1215_v49 = vperm.slane %v1824_v57, 5  ;;  %v1216_v51 = vperm.slane %v1831_v60, 5 }
  0xa6   :  { %v1536_v17 = vpop.eup %1535  ;;  %1547 = vlog2.f32 %v921_v55  ;;  %v1214_v40 = vmul.f32 %v1212_v44, %v1684_v20  ;;  %v468_v44 = vperm.slane %v1681_v11, 3 }
  0xa7   :  { %v1538_v19 = vpop.eup %1537  ;;  %v816_v24 = vmul.f32 0.6931472, %v1536_v17  ;;  %1549 = vlog2.f32 %v922_v56  ;;  %v1099_v15 = vadd.f32 %v1097_v9, %v1095_v8 }
  0xa8   :  { %v1540_v21 = vpop.eup %1539  ;;  %v818_v26 = vmul.f32 0.6931472, %v1538_v19  ;;  %v1218_v56 = vadd.f32 %v1216_v51, %v1214_v40 }
  0xa9   :  { %v1542_v23 = vpop.eup %1541  ;;  %v812_v27 = vmul.f32 0.6931472, %v1540_v21  ;;  %v1105_v21 = vsub.f32 1.0, %v1099_v15 }
  0xaa   :  { %v814_v28 = vmul.f32 0.6931472, %v1542_v23  ;;  %v1544_v58 = vpop.eup %1543 }
  0xab   :  { %v819_v31 = vsub.f32 %v812_v27, %v816_v24  ;;  %v1546_v61 = vpop.eup %1545  ;;  %v934_v1 = vmul.f32 0.6931472, %v1544_v58  ;;  %v1107_v25 = vmax.f32 %v1105_v21, 0.001  ;;  %v1101_v27 = vmax.f32 %v1099_v15, 0.001 }
  0xac   :  { %v820_v35 = vsub.f32 %v814_v28, %v818_v26  ;;  %v1548_v62 = vpop.eup %1547  ;;  %v936_v4 = vmul.f32 0.6931472, %v1546_v61 }
  0xad   :  { %v821_v37 = vpack.c.bf16 %v819_v31, %v819_v31  ;;  %v930_v5 = vmul.f32 0.6931472, %v1548_v62  ;;  %v1109_v29 = vmin.f32 %v1107_v25, 1.0  ;;  %v1103_v31 = vmin.f32 %v1101_v27, 1.0 }
  0xae   :  { %v822_v43 = vpack.c.bf16 %v820_v35, %v820_v35 }
  0xaf   :  { %v824_v45 = vsel %vm134_vm0, %v821_v37, 0  ;;  %v937_v10 = vsub.f32 %v930_v5, %v934_v1  ;;  %1551 = vlog2.f32 %v1109_v29  ;;  %v1211_v37 = vperm.slane %v1824_v57, 2 }
  0xb0   :  { %1410 = vmatmul.msk.bf16.vlgmr.msrb.gmra.mxu0 %vm127_vm1, %v1778_v59  ;;  %v827_v47 = vsel %vm134_vm0, %v822_v43, 0  ;;  %v1224_v1 = vsub.f32 1.0, %v1218_v56  ;;  %v463_v29 = vperm.slane %v1676_v6, 0 }
  0xb1   :  { %1412 = vmatmul.msk.bf16.vlgmr.msrb.gmra.mxu1 %vm127_vm1, %v1778_v59  ;;  %654 = vmatpush.bf16.msrb.mxu0 %v642_v0  ;;  %v1550_v0 = vpop.eup %1549  ;;  %v939_v17 = vpack.c.bf16 %v937_v10, %v937_v10  ;;  %v1213_v48 = vmul.f32 %v1211_v37, %v1684_v20  ;;  %v1220_v10 = vmax.f32 %v1218_v56, 0.001 }
  0xb2   :  { %673 = vmatpush.bf16.msrb.mxu1 %v645_v2  ;;  %v1094_v2 = vperm.slane %v1831_v60, 1  ;;  %v932_v7 = vmul.f32 0.6931472, %v1550_v0  ;;  %v1226_v5 = vmax.f32 %v1224_v1, 0.001  ;;  %v465_v37 = vmul.f32 %v463_v29, %v1684_v20 }
  0xb3   :  { %v942_v22 = vsel %vm134_vm0, %v939_v17, 0  ;;  %v1217_v54 = vadd.f32 %v1215_v49, %v1213_v48  ;;  %v1222_v15 = vmin.f32 %v1220_v10, 1.0 }
  0xb4   :  { %v1096_v12 = vmul.f32 %v1094_v2, %v1684_v20  ;;  %v938_v14 = vsub.f32 %v932_v7, %v936_v4 }
  0xb5   :  { %v1552_v34 = vpop.eup %1551  ;;  %v1223_v63 = vsub.f32 1.0, %v1217_v54  ;;  %v1219_v8 = vmax.f32 %v1217_v54, 0.001 }
  0xb6   :  { %v1100_v18 = vadd.f32 %v1098_v13, %v1096_v12  ;;  %v940_v19 = vpack.c.bf16 %v938_v14, %v938_v14  ;;  %v1116_v43 = vmul.f32 0.6931472, %v1552_v34  ;;  %v1228_v13 = vmin.f32 %v1226_v5, 1.0 }
  0xb7   :  { %v1225_v4 = vmax.f32 %v1223_v63, 0.001  ;;  %v1221_v14 = vmin.f32 %v1219_v8, 1.0 }
  0xb8   :  { %v1106_v23 = vsub.f32 1.0, %v1100_v18  ;;  %v945_v24 = vsel %vm134_vm0, %v940_v19, 0  ;;  %v1102_v28 = vmax.f32 %v1100_v18, 0.001 }
  0xb9   :  { %v1227_v12 = vmin.f32 %v1225_v4, 1.0 }
  0xba   :  { %v1108_v26 = vmax.f32 %v1106_v23, 0.001  ;;  %v1104_v33 = vmin.f32 %v1102_v28, 1.0 }
  0xbc   :  { %v1110_v30 = vmin.f32 %v1108_v26, 1.0 }
  0xbe   :  { %1553 = vlog2.f32 %v1110_v30 }
  0xbf   :  { %1555 = vlog2.f32 %v1103_v31 }
  0xc0   :  { %1411 = vmatmul.msk.bf16.gmra.mxu0 %vm127_vm1, %v1795_v16  ;;  %1557 = vlog2.f32 %v1104_v33  ;;  %v464_v33 = vperm.slane %v1681_v11, 0 }
  0xc1   :  { %1413 = vmatmul.msk.bf16.gmra.mxu1 %vm127_vm1, %v1795_v16  ;;  %1559 = vlog2.f32 %v1227_v12 }
  0xc2   :  { %1561 = vlog2.f32 %v1228_v13 }
  0xc3   :  { %1563 = vlog2.f32 %v1221_v14 }
  0xc4   :  { %v1554_v35 = vpop.eup %1553  ;;  %1565 = vlog2.f32 %v1222_v15 }
  0xc5   :  { %v1556_v32 = vpop.eup %1555 }
  0xc6   :  { %v1558_v41 = vpop.eup %1557  ;;  %v1112_v46 = vmul.f32 0.6931472, %v1556_v32 }
  0xc7   :  { %v1560_v19 = vpop.eup %1559 }
  0xc8   :  { %v1119_v50 = vsub.f32 %v1112_v46, %v1116_v43  ;;  %v1562_v21 = vpop.eup %1561  ;;  %v1234_v26 = vmul.f32 0.6931472, %v1560_v19  ;;  %v466_v43 = vmul.f32 %v464_v33, %v1684_v20 }
  0xc9   :  { %v1236_v28 = vmul.f32 0.6931472, %v1562_v21 }
  0xca   :  { %v1121_v55 = vpack.c.bf16 %v1119_v50, %v1119_v50  ;;  %v470_v51 = vadd.f32 %v468_v44, %v466_v43 }
  0xcc   :  { %v1124_v0 = vsel %vm134_vm0, %v1121_v55, 0  ;;  %v476_v54 = vsub.f32 1.0, %v470_v51  ;;  %v472_v4 = vmax.f32 %v470_v51, 0.001 }
  0xce   :  { %v478_v63 = vmax.f32 %v476_v54, 0.001  ;;  %v474_v12 = vmin.f32 %v472_v4, 1.0 }
  0xd0   :  { %1428 = vmatmul.msk.bf16.vlgmr.msra.gmra.mxu0 %vm127_vm1, %v1711_v52  ;;  %v480_v8 = vmin.f32 %v478_v63, 1.0 }
  0xd1   :  { %1430 = vmatmul.msk.bf16.vlgmr.msra.gmra.mxu1 %vm127_vm1, %v1711_v52  ;;  %836 = vmatpush.bf16.msra.mxu0 %v824_v45  ;;  %v1118_v45 = vmul.f32 0.6931472, %v1554_v35 }
  0xd2   :  { %855 = vmatpush.bf16.msra.mxu1 %v827_v47  ;;  %v1114_v47 = vmul.f32 0.6931472, %v1558_v41  ;;  %v467_v41 = vperm.slane %v1676_v6, 3 }
  0xd4   :  { %v1120_v53 = vsub.f32 %v1114_v47, %v1118_v45  ;;  %v469_v49 = vadd.f32 %v467_v41, %v465_v37 }
  0xd6   :  { %v1122_v61 = vpack.c.bf16 %v1120_v53, %v1120_v53  ;;  %v475_v11 = vsub.f32 1.0, %v469_v49  ;;  %v471_v1 = vmax.f32 %v469_v49, 0.001 }
  0xd8   :  { %v1127_v2 = vsel %vm134_vm0, %v1122_v61, 0  ;;  %v477_v56 = vmax.f32 %v475_v11, 0.001  ;;  %v473_v10 = vmin.f32 %v471_v1, 1.0 }
  0xda   :  { %v479_v5 = vmin.f32 %v477_v56, 1.0 }
  0xdc   :  { %1567 = vlog2.f32 %v479_v5 }
  0xdd   :  { %1569 = vlog2.f32 %v480_v8 }
  0xde   :  { %1571 = vlog2.f32 %v473_v10 }
  0xdf   :  { %1573 = vlog2.f32 %v474_v12 }
  0xe0   :  { %1429 = vmatmul.msk.bf16.gmra.mxu0 %vm127_vm1, %v1744_v36 }
  0xe1   :  { %1431 = vmatmul.msk.bf16.gmra.mxu1 %vm127_vm1, %v1744_v36 }
  0xee   :  { %v1906_v44 = vpop.permute.xlu2 %344 }
  0xf0   :  { %1436 = vmatmul.msk.bf16.vlgmr.msrb.gmra.mxu0 %vm127_vm1, %v1778_v59 }
  0xf1   :  { %1438 = vmatmul.msk.bf16.vlgmr.msrb.gmra.mxu1 %vm127_vm1, %v1778_v59  ;;  %954 = vmatpush.bf16.msrb.mxu0 %v942_v22  ;;  %v1564_v22 = vpop.eup %1563 }
  0xf2   :  { %973 = vmatpush.bf16.msrb.mxu1 %v945_v24  ;;  %v1566_v24 = vpop.eup %1565  ;;  %v1230_v31 = vmul.f32 0.6931472, %v1564_v22 }
  0xf3   :  { %v1232_v34 = vmul.f32 0.6931472, %v1566_v24  ;;  %v1568_v29 = vpop.eup %1567 }
  0xf4   :  { %v1237_v35 = vsub.f32 %v1230_v31, %v1234_v26  ;;  %v486_v51 = vmul.f32 0.6931472, %v1568_v29 }
  0xf5   :  { %v1238_v32 = vsub.f32 %v1232_v34, %v1236_v28  ;;  %v1570_v34 = vpop.eup %1569 }
  0xf6   :  { %v1239_v45 = vpack.c.bf16 %v1237_v35, %v1237_v35  ;;  %v1899_v35 = vpop.permute.xlu0 %349  ;;  %v1572_v37 = vpop.eup %1571 }
  0xf7   :  { %v1240_v48 = vpack.c.bf16 %v1238_v32, %v1238_v32 }
  0xf8   :  { %v1242_v53 = vsel %vm134_vm0, %v1239_v45, 0  ;;  %v1891_v13 = vpop.permute.xlu1 %354 }
  0xf9   :  { %v1245_v6 = vsel %vm134_vm0, %v1240_v48, 0 }
 0x100   :  { %1437 = vmatmul.msk.bf16.gmra.mxu0 %vm127_vm1, %v1795_v16 }
 0x101   :  { %1439 = vmatmul.msk.bf16.gmra.mxu1 %vm127_vm1, %v1795_v16 }
 0x10d   :  { %v1855_v58 = vpop.f32.mrf.mxu0 }
 0x10e   :  { %v1857_v62 = vpop.f32.mrf.mxu1 }
 0x110   :  { %1446 = vmatmul.msk.bf16.vlgmr.msra.gmra.mxu0 %vm127_vm1, %v1711_v52 }
 0x111   :  { %1448 = vmatmul.msk.bf16.vlgmr.msra.gmra.mxu1 %vm127_vm1, %v1711_v52  ;;  %1136 = vmatpush.bf16.msra.mxu0 %v1124_v0 }
 0x112   :  { %1155 = vmatpush.bf16.msra.mxu1 %v1127_v2 }
 0x115   :  { %v1865_v7 = vpop.f32.mrf.mxu0 }
 0x116   :  { %v1867_v9 = vpop.f32.mrf.mxu1  ;;  %v1873_v23 = vpop.f32.mrf.mxu2 }
 0x118   :  { %v1875_v25 = vpop.f32.mrf.mxu3 }
 0x119   :  { %v230_v41 = vadd.f32 %v1875_v25, %v1857_v62  ;;  %v488_v62 = vmul.f32 0.6931472, %v1570_v34 }
 0x11d   :  { %v155_v17 = vpop.f32.mrf.mxu0 }
 0x11e   :  { %v174_v18 = vpop.f32.mrf.mxu1  ;;  %v212_v46 = vpop.f32.mrf.mxu2 }
 0x11f   :  { %v213_v24 = vadd.f32 %v212_v46, %v1865_v7 }
 0x120   :  { %1447 = vmatmul.msk.bf16.gmra.mxu0 %vm127_vm1, %v1744_v36  ;;  %v231_v50 = vpop.f32.mrf.mxu3 }
 0x121   :  { %1449 = vmatmul.msk.bf16.gmra.mxu1 %vm127_vm1, %v1744_v36  ;;  %v232_v31 = vadd.f32 %v231_v50, %v1867_v9  ;;  %v1574_v9 = vpop.eup %1573 }
 0x122   :  { %v484_v54 = vmul.f32 0.6931472, %v1574_v9 }
 0x125   :  { %v157_v27 = vpop.f32.mrf.mxu0 }
 0x126   :  { %v1878_v30 = vpop.f32.mrf.mxu1  ;;  %v215_v0 = vpop.f32.mrf.mxu2 }
 0x127   :  { %v216_v19 = vadd.f32 %v215_v0, %v155_v17  ;;  %v211_v17 = vadd.f32 %v1873_v23, %v1855_v58  ;;  %v1909_v23 = vpop.permute.xlu1 %339 }
 0x128   :  { %v234_v2 = vpop.f32.mrf.mxu3 }
 0x129   :  { %v235_v21 = vadd.f32 %v234_v2, %v174_v18  ;;  %v490_v2 = vsub.f32 %v484_v54, %v488_v62 }
 0x12d   :  { %v300_v47 = vpop.f32.mrf.mxu0 }
 0x12e   :  { %v319_v40 = vpop.f32.mrf.mxu1  ;;  %v217_v22 = vpop.f32.mrf.mxu2  ;;  %v329_v46 = vadd.f32 %v300_v47, %v211_v17 }
 0x12f   :  { %v218_v32 = vadd.f32 %v217_v22, %v157_v27  ;;  %v330_v58 = vadd.f32 %v319_v40, %v230_v41  ;;  %v1978_v9 = vpop.permute.xlu1 %389 }
 0x130   :  { %1454 = vmatmul.msk.bf16.vlgmr.msrb.gmra.mxu0 %vm127_vm1, %v1778_v59  ;;  %v236_v26 = vpop.f32.mrf.mxu3  ;;  %v357_v40 = vadd.f32 %v1909_v23, %v329_v46 }
 0x131   :  { %1456 = vmatmul.msk.bf16.vlgmr.msrb.gmra.mxu1 %vm127_vm1, %v1778_v59  ;;  %1254 = vmatpush.bf16.msrb.mxu0 %v1242_v53  ;;  %v237_v7 = vadd.f32 %v236_v26, %v1878_v30  ;;  %v358_v1 = vadd.f32 %v1909_v23, %v330_v58 }
 0x132   :  { %1273 = vmatpush.bf16.msrb.mxu1 %v1245_v6  ;;  %v482_v6 = vmul.f32 0.6931472, %v1572_v37  ;;  %v365_v12 = vmax.f32 %v357_v40, 0.0 }
 0x135   :  { %v302_v55 = vpop.f32.mrf.mxu0 }
 0x136   :  { %v321_v61 = vpop.f32.mrf.mxu1  ;;  %v331_v18 = vadd.f32 %v302_v55, %v213_v24  ;;  %v1923_v24 = vld [vmem:[%s2119_s4] sm:$0xff] }
 0x137   :  { %v332_v43 = vadd.f32 %v321_v61, %v232_v31  ;;  %v489_v61 = vsub.f32 %v482_v6, %v486_v51  ;;  %v763_v6 = vperm.slane %v1756_v39, 0 }
 0x138   :  { %v359_v30 = vadd.f32 %v1906_v44, %v331_v18 }
 0x139   :  { %v360_v47 = vadd.f32 %v1906_v44, %v332_v43 }
 0x13a   :  { %v367_v5 = vmax.f32 %v359_v30, 0.0 }
 0x13b   :  { %v368_v10 = vmax.f32 %v360_v47, 0.0 }
 0x13d   :  { %v305_v14 = vpop.f32.mrf.mxu0 }
 0x13e   :  { %v324_v15 = vpop.f32.mrf.mxu1  ;;  %v333_v28 = vadd.f32 %v305_v14, %v216_v19  ;;  %v491_v14 = vpack.c.bf16 %v489_v61, %v489_v61  ;;  %v492_v19 = vpack.c.bf16 %v490_v2, %v490_v2  ;;  %v768_v61 = vperm.slane %v1763_v42, 3 }
 0x13f   :  { %v334_v33 = vadd.f32 %v324_v15, %v235_v21  ;;  %v366_v15 = vmax.f32 %v358_v1, 0.0  ;;  %v373_v21 = vpack.c.bf16 %v367_v5, %v365_v12 }
 0x140   :  { %1455 = vmatmul.msk.bf16.gmra.mxu0 %vm127_vm1, %v1795_v16  ;;  %v361_v48 = vadd.f32 %v1899_v35, %v333_v28  ;;  %v568_v26 = vsel %vm134_vm0, %v491_v14, 0  ;;  %v571_v28 = vsel %vm134_vm0, %v492_v19, 0 }
 0x141   :  { %1457 = vmatmul.msk.bf16.gmra.mxu1 %vm127_vm1, %v1795_v16  ;;  %v362_v27 = vadd.f32 %v1899_v35, %v334_v33  ;;  %v374_v22 = vpack.c.bf16 %v368_v10, %v366_v15 }
 0x142   :  { %v369_v55 = vmax.f32 %v361_v48, 0.0 }
 0x143   :  { %v370_v63 = vmax.f32 %v362_v27, 0.0 }
 0x145   :  { %v307_v45 = vpop.f32.mrf.mxu0 }
 0x146   :  { %v335_v49 = vadd.f32 %v307_v45, %v218_v32  ;;  %v326_v50 = vpop.f32.mrf.mxu1  ;;  %v1974_v32 = vpop.permute.xlu0 %384 }
 0x147   :  { %v336_v53 = vadd.f32 %v326_v50, %v237_v7 }
 0x148   :  { %v363_v25 = vadd.f32 %v1891_v13, %v335_v49 }
 0x149   :  { %v364_v11 = vadd.f32 %v1891_v13, %v336_v53 }
 0x14a   :  { %v371_v56 = vmax.f32 %v363_v25, 0.0 }
 0x14b   :  { %v372_v0 = vmax.f32 %v364_v11, 0.0  ;;  %v764_v11 = vperm.slane %v1763_v42, 0 }
 0x14c   :  { %v375_v4 = vpack.c.bf16 %v371_v56, %v369_v55  ;;  %v765_v55 = vmul.f32 %v763_v6, %v1684_v20  ;;  %v767_v56 = vperm.slane %v1756_v39, 3 }
 0x14d   :  { %v376_v8 = vpack.c.bf16 %v372_v0, %v370_v63  ;;  %v766_v40 = vmul.f32 %v764_v11, %v1684_v20 }
 0x14e   :  { %420 = vmatpush.bf16.msrb.mxu2 %v375_v4  ;;  %v769_v1 = vadd.f32 %v767_v56, %v765_v55 }
 0x14f   :  { %439 = vmatpush.bf16.msrb.mxu3 %v376_v8  ;;  %v770_v2 = vadd.f32 %v768_v61, %v766_v40 }
 0x150   :  { %1464 = vmatmul.msk.bf16.vlgmr.msra.gmra.mxu0 %vm127_vm1, %v1711_v52  ;;  %v775_v5 = vsub.f32 1.0, %v769_v1 }
 0x151   :  { %1466 = vmatmul.msk.bf16.vlgmr.msra.gmra.mxu1 %vm127_vm1, %v1711_v52  ;;  %v1938_v52 = vld [vmem:[%s2119_s4 + $0x8] sm:$0xff]  ;;  %v776_v10 = vsub.f32 1.0, %v770_v2 }
 0x152   :  { %421 = vmatpush.bf16.msrb.mxu2 %v373_v21  ;;  %v777_v15 = vmax.f32 %v775_v5, 0.001  ;;  %v771_v21 = vmax.f32 %v769_v1, 0.001 }
 0x153   :  { %440 = vmatpush.bf16.msrb.mxu3 %v374_v22  ;;  %v778_v19 = vmax.f32 %v776_v10, 0.001  ;;  %v772_v22 = vmax.f32 %v770_v2, 0.001 }
 0x155   :  { %1422 = vmatmul.msk.bf16.vlgmr.msrb.gmra.mxu2 %vm407_vm2, %v1923_v24  ;;  %v780_v39 = vmin.f32 %v778_v19, 1.0 }
 0x156   :  { %580 = vmatpush.bf16.msra.mxu2 %v568_v26  ;;  %1424 = vmatmul.msk.bf16.vlgmr.msrb.gmra.mxu3 %vm407_vm2, %v1923_v24  ;;  %v779_v26 = vmin.f32 %v777_v15, 1.0 }
 0x157   :  { %599 = vmatpush.bf16.msra.mxu3 %v571_v28 }
 0x158   :  { %1575 = vlog2.f32 %v779_v26 }
 0x159   :  { %1577 = vlog2.f32 %v780_v39 }
 0x160   :  { %1465 = vmatmul.msk.bf16.gmra.mxu0 %vm127_vm1, %v1744_v36 }
 0x161   :  { %1467 = vmatmul.msk.bf16.gmra.mxu1 %vm127_vm1, %v1744_v36  ;;  %v1962_v36 = vpop.f32.mrf.mxu0 }
 0x165   :  { %1423 = vmatmul.msk.bf16.gmra.mxu2 %vm407_vm2, %v1938_v52 }
 0x166   :  { %1425 = vmatmul.msk.bf16.gmra.mxu3 %vm407_vm2, %v1938_v52 }
 0x169   :  { %v1966_v29 = vpop.f32.mrf.mxu0 }
 0x170   :  { %1472 = vmatmul.msk.bf16.vlgmr.msrb.gmra.mxu0 %vm127_vm1, %v1778_v59 }
 0x171   :  { %1474 = vmatmul.msk.bf16.vlgmr.msrb.gmra.mxu1 %vm127_vm1, %v1778_v59  ;;  %v1964_v59 = vpop.f32.mrf.mxu1  ;;  %v543_v37 = vpop.f32.mrf.mxu0 }
 0x175   :  { %1432 = vmatmul.msk.bf16.vlgmr.msra.gmra.mxu2 %vm127_vm1, %v1719_v3 }
 0x176   :  { %1434 = vmatmul.msk.bf16.vlgmr.msra.gmra.mxu3 %vm127_vm1, %v1719_v3  ;;  %v1970_v3 = vpop.permute.xlu2 %379 }
 0x179   :  { %v1968_v31 = vpop.f32.mrf.mxu1  ;;  %v545_v51 = vpop.f32.mrf.mxu0 }
 0x17e   :  { %v1982_v27 = vpop.permute.xlu2 %394 }
 0x180   :  { %1473 = vmatmul.msk.bf16.gmra.mxu0 %vm127_vm1, %v1795_v16 }
 0x181   :  { %1475 = vmatmul.msk.bf16.gmra.mxu1 %vm127_vm1, %v1795_v16  ;;  %v562_v43 = vpop.f32.mrf.mxu1  ;;  %v656_v47 = vpop.f32.mrf.mxu0 }
 0x185   :  { %1433 = vmatmul.msk.bf16.gmra.mxu2 %vm127_vm1, %v1749_v38 }
 0x186   :  { %1435 = vmatmul.msk.bf16.gmra.mxu3 %vm127_vm1, %v1749_v38 }
 0x189   :  { %v564_v58 = vpop.f32.mrf.mxu1  ;;  %v658_v4 = vpop.f32.mrf.mxu0 }
 0x191   :  { %v675_v54 = vpop.f32.mrf.mxu1  ;;  %v661_v28 = vpop.f32.mrf.mxu0 }
 0x199   :  { %v677_v8 = vpop.f32.mrf.mxu1  ;;  %v663_v55 = vpop.f32.mrf.mxu0 }
 0x1a1   :  { %v680_v42 = vpop.f32.mrf.mxu1 }
 0x1a9   :  { %v682_v61 = vpop.f32.mrf.mxu1 }
 0x1d8   :  { %v423_v33 = vpop.f32.mrf.mxu2 }
 0x1d9   :  { %v424_v34 = vadd.f32 %v423_v33, %v1970_v3  ;;  %v442_v16 = vpop.f32.mrf.mxu3 }
 0x1da   :  { %v443_v17 = vadd.f32 %v442_v16, %v1970_v3 }
 0x1db   :  { %452 = vst [vmem:[#allocation2] sm:$0xff] %v424_v34  ;;  %v773_v34 = vmin.f32 %v771_v21, 1.0 }
 0x1dc   :  { %453 = vst [vmem:[#allocation2 + $0x8] sm:$0xff] %v443_v17  ;;  %v774_v17 = vmin.f32 %v772_v22, 1.0 }
 0x1dd   :  { %1579 = vlog2.f32 %v773_v34 }
 0x1de   :  { %1581 = vlog2.f32 %v774_v17 }
 0x1e0   :  { %v425_v18 = vpop.f32.mrf.mxu2 }
 0x1e1   :  { %v426_v41 = vadd.f32 %v425_v18, %v1974_v32  ;;  %v444_v7 = vpop.f32.mrf.mxu3 }
 0x1e2   :  { %v445_v45 = vadd.f32 %v444_v7, %v1974_v32 }
 0x1e3   :  { %454 = vst [vmem:[#allocation2 + $0x10] sm:$0xff] %v426_v41 }
 0x1e4   :  { %455 = vst [vmem:[#allocation2 + $0x18] sm:$0xff] %v445_v45 }
 0x1e8   :  { %v428_v46 = vpop.f32.mrf.mxu2 }
 0x1e9   :  { %v429_v48 = vadd.f32 %v428_v46, %v1978_v9  ;;  %v447_v49 = vpop.f32.mrf.mxu3 }
 0x1ea   :  { %v448_v50 = vadd.f32 %v447_v49, %v1978_v9  ;;  %v1576_v49 = vpop.eup %1575 }
 0x1eb   :  { %456 = vst [vmem:[#allocation2 + $0x20] sm:$0xff] %v429_v48 }
 0x1ec   :  { %457 = vst [vmem:[#allocation2 + $0x28] sm:$0xff] %v448_v50 }
 0x1f0   :  { %v430_v53 = vpop.f32.mrf.mxu2 }
 0x1f1   :  { %v431_v62 = vadd.f32 %v430_v53, %v1982_v27  ;;  %v449_v25 = vpop.f32.mrf.mxu3 }
 0x1f2   :  { %v450_v30 = vadd.f32 %v449_v25, %v1982_v27  ;;  %v1578_v25 = vpop.eup %1577 }
 0x1f3   :  { %458 = vst [vmem:[#allocation2 + $0x30] sm:$0xff] %v431_v62  ;;  %v1580_v11 = vpop.eup %1579  ;;  %v788_v2 = vmul.f32 0.6931472, %v1578_v25 }
 0x1f4   :  { %459 = vst [vmem:[#allocation2 + $0x38] sm:$0xff] %v450_v30  ;;  %v782_v5 = vmul.f32 0.6931472, %v1580_v11 }
 0x1f8   :  { %v582_v63 = vpop.f32.mrf.mxu2 }
 0x1f9   :  { %v601_v0 = vpop.f32.mrf.mxu3  ;;  %v583_v46 = vadd.f32 %v582_v63, %v1962_v36  ;;  %v786_v63 = vmul.f32 0.6931472, %v1576_v49  ;;  %v2029_v49 = vpop.f32.mrf.mxu1 }
 0x1fa   :  { %v602_v50 = vadd.f32 %v601_v0, %v1964_v59 }
 0x1fb   :  { %v685_v40 = vadd.f32 %v656_v47, %v583_v46  ;;  %v789_v15 = vsub.f32 %v782_v5, %v786_v63  ;;  %v2017_v46 = vld [vmem:[%s2117_s2] sm:$0xff] }
 0x1fc   :  { %v686_v1 = vadd.f32 %v675_v54, %v602_v50 }
 0x1fd   :  { %v693_v10 = vadd.f32 %v685_v40, %v1909_v23 }
 0x1fe   :  { %v694_v54 = vadd.f32 %v686_v1, %v1909_v23 }
 0x1ff   :  { %v701_v34 = vmax.f32 %v693_v10, 0.0 }
 0x200   :  { %v584_v12 = vpop.f32.mrf.mxu2 }
 0x201   :  { %v603_v14 = vpop.f32.mrf.mxu3  ;;  %v585_v7 = vadd.f32 %v584_v12, %v1966_v29  ;;  %v1582_v29 = vpop.eup %1581 }
 0x202   :  { %v604_v45 = vadd.f32 %v603_v14, %v1968_v31  ;;  %v784_v47 = vmul.f32 0.6931472, %v1582_v29 }
 0x203   :  { %v687_v30 = vadd.f32 %v658_v4, %v585_v7 }
 0x204   :  { %v790_v22 = vsub.f32 %v784_v47, %v788_v2  ;;  %v1067_v47 = vperm.slane %v1824_v57, 3 }
 0x205   :  { %v695_v4 = vadd.f32 %v687_v30, %v1906_v44 }
 0x206   :  { %v792_v17 = vpack.c.bf16 %v790_v22, %v790_v22 }
 0x207   :  { %v703_v26 = vmax.f32 %v695_v4, 0.0  ;;  %v1063_v4 = vperm.slane %v1824_v57, 0 }
 0x208   :  { %v587_v33 = vpop.f32.mrf.mxu2 }
 0x209   :  { %v606_v16 = vpop.f32.mrf.mxu3  ;;  %v588_v18 = vadd.f32 %v587_v33, %v543_v37 }
 0x20a   :  { %v607_v41 = vadd.f32 %v606_v16, %v562_v43  ;;  %v688_v43 = vadd.f32 %v677_v8, %v604_v45  ;;  %v702_v16 = vmax.f32 %v694_v54, 0.0  ;;  %v871_v45 = vsel %vm134_vm0, %v792_v17, 0 }
 0x20b   :  { %v689_v48 = vadd.f32 %v661_v28, %v588_v18  ;;  %v709_v18 = vpack.c.bf16 %v703_v26, %v701_v34 }
 0x20c   :  { %v690_v53 = vadd.f32 %v680_v42, %v607_v41  ;;  %v696_v8 = vadd.f32 %v688_v43, %v1906_v44  ;;  %v791_v42 = vpack.c.bf16 %v789_v15, %v789_v15 }
 0x20d   :  { %v697_v31 = vadd.f32 %v689_v48, %v1899_v35  ;;  %v2027_v48 = vpop.f32.mrf.mxu0 }
 0x20e   :  { %v698_v59 = vadd.f32 %v690_v53, %v1899_v35  ;;  %v704_v28 = vmax.f32 %v696_v8, 0.0  ;;  %v868_v7 = vsel %vm134_vm0, %v791_v42, 0  ;;  %v2033_v53 = vpop.f32.mrf.mxu1 }
 0x20f   :  { %v705_v12 = vmax.f32 %v697_v31, 0.0 }
 0x210   :  { %v589_v62 = vpop.f32.mrf.mxu2  ;;  %v706_v19 = vmax.f32 %v698_v59, 0.0  ;;  %v710_v41 = vpack.c.bf16 %v704_v28, %v702_v16 }
 0x211   :  { %v590_v6 = vadd.f32 %v589_v62, %v545_v51  ;;  %v608_v37 = vpop.f32.mrf.mxu3 }
 0x212   :  { %v609_v56 = vadd.f32 %v608_v37, %v564_v58 }
 0x213   :  { %v691_v36 = vadd.f32 %v663_v55, %v590_v6 }
 0x214   :  { %v692_v0 = vadd.f32 %v682_v61, %v609_v56 }
 0x215   :  { %v699_v51 = vadd.f32 %v691_v36, %v1891_v13  ;;  %v2031_v50 = vpop.f32.mrf.mxu0 }
 0x216   :  { %v700_v58 = vadd.f32 %v692_v0, %v1891_v13  ;;  %v862_v55 = vpop.f32.mrf.mxu1 }
 0x217   :  { %v707_v14 = vmax.f32 %v699_v51, 0.0  ;;  %v1064_v51 = vperm.slane %v1831_v60, 0 }
 0x218   :  { %v708_v21 = vmax.f32 %v700_v58, 0.0  ;;  %v1065_v58 = vmul.f32 %v1063_v4, %v1684_v20 }
 0x219   :  { %v711_v39 = vpack.c.bf16 %v707_v14, %v705_v12  ;;  %v1066_v10 = vmul.f32 %v1064_v51, %v1684_v20  ;;  %v1068_v12 = vperm.slane %v1831_v60, 3 }
 0x21a   :  { %v712_v33 = vpack.c.bf16 %v708_v21, %v706_v19  ;;  %v1069_v54 = vadd.f32 %v1067_v47, %v1065_v58 }
 0x21b   :  { %719 = vmatpush.bf16.msrb.mxu2 %v711_v39  ;;  %v1070_v19 = vadd.f32 %v1068_v12, %v1066_v10 }
 0x21c   :  { %738 = vmatpush.bf16.msrb.mxu3 %v712_v33  ;;  %v1075_v22 = vsub.f32 1.0, %v1069_v54  ;;  %v1071_v16 = vmax.f32 %v1069_v54, 0.001 }
 0x21d   :  { %v843_v11 = vpop.f32.mrf.mxu0  ;;  %v1076_v39 = vsub.f32 1.0, %v1070_v19  ;;  %v1072_v17 = vmax.f32 %v1070_v19, 0.001 }
 0x21e   :  { %v864_v63 = vpop.f32.mrf.mxu1  ;;  %v1077_v34 = vmax.f32 %v1075_v22, 0.001 }
 0x21f   :  { %720 = vmatpush.bf16.msrb.mxu2 %v709_v18  ;;  %v1078_v42 = vmax.f32 %v1076_v39, 0.001 }
 0x220   :  { %739 = vmatpush.bf16.msrb.mxu3 %v710_v41  ;;  %v1079_v18 = vmin.f32 %v1077_v34, 1.0 }
 0x221   :  { %v1080_v57 = vmin.f32 %v1078_v42, 1.0 }
 0x222   :  { %1440 = vmatmul.msk.bf16.vlgmr.msrb.gmra.mxu2 %vm407_vm2, %v1923_v24  ;;  %1583 = vlog2.f32 %v1079_v18 }
 0x223   :  { %880 = vmatpush.bf16.msra.mxu2 %v868_v7  ;;  %1442 = vmatmul.msk.bf16.vlgmr.msrb.gmra.mxu3 %vm407_vm2, %v1923_v24  ;;  %v1073_v7 = vmin.f32 %v1071_v16, 1.0  ;;  %1585 = vlog2.f32 %v1080_v57 }
 0x224   :  { %899 = vmatpush.bf16.msra.mxu3 %v871_v45 }
 0x225   :  { %v845_v36 = vpop.f32.mrf.mxu0  ;;  %1587 = vlog2.f32 %v1073_v7 }
 0x226   :  { %v975_v8 = vpop.f32.mrf.mxu1 }
 0x22d   :  { %v956_v5 = vpop.f32.mrf.mxu0 }
 0x22e   :  { %v977_v26 = vpop.f32.mrf.mxu1 }
 0x232   :  { %1441 = vmatmul.msk.bf16.gmra.mxu2 %vm407_vm2, %v1938_v52 }
 0x233   :  { %1443 = vmatmul.msk.bf16.gmra.mxu3 %vm407_vm2, %v1938_v52 }
 0x235   :  { %v958_v21 = vpop.f32.mrf.mxu0 }
 0x236   :  { %v980_v60 = vpop.f32.mrf.mxu1 }
 0x23d   :  { %v961_v41 = vpop.f32.mrf.mxu0 }
 0x23e   :  { %v982_v58 = vpop.f32.mrf.mxu1 }
 0x242   :  { %1450 = vmatmul.msk.bf16.vlgmr.msra.gmra.mxu2 %vm127_vm1, %v2017_v46 }
 0x243   :  { %1452 = vmatmul.msk.bf16.vlgmr.msra.gmra.mxu3 %vm127_vm1, %v2017_v46 }
 0x252   :  { %1451 = vmatmul.msk.bf16.gmra.mxu2 %vm127_vm1, %v1749_v38 }
 0x253   :  { %1453 = vmatmul.msk.bf16.gmra.mxu3 %vm127_vm1, %v1749_v38 }
 0x2a5   :  { %v722_v62 = vpop.f32.mrf.mxu2 }
 0x2a6   :  { %v723_v25 = vadd.f32 %v722_v62, %v1970_v3  ;;  %v741_v30 = vpop.f32.mrf.mxu3  ;;  %v1074_v62 = vmin.f32 %v1072_v17, 1.0 }
 0x2a7   :  { %v742_v6 = vadd.f32 %v741_v30, %v1970_v3 }
 0x2a8   :  { %752 = vst [vmem:[#allocation2 + $0x40] sm:$0xff] %v723_v25  ;;  %1589 = vlog2.f32 %v1074_v62 }
 0x2a9   :  { %753 = vst [vmem:[#allocation2 + $0x48] sm:$0xff] %v742_v6 }
 0x2ad   :  { %v724_v37 = vpop.f32.mrf.mxu2 }
 0x2ae   :  { %v725_v38 = vadd.f32 %v724_v37, %v1974_v32  ;;  %v743_v43 = vpop.f32.mrf.mxu3 }
 0x2af   :  { %v744_v56 = vadd.f32 %v743_v43, %v1974_v32 }
 0x2b0   :  { %754 = vst [vmem:[#allocation2 + $0x50] sm:$0xff] %v725_v38 }
 0x2b1   :  { %755 = vst [vmem:[#allocation2 + $0x58] sm:$0xff] %v744_v56  ;;  %v1584_v56 = vpop.eup %1583 }
 0x2b2   :  { %v1086_v47 = vmul.f32 0.6931472, %v1584_v56 }
 0x2b5   :  { %v727_v29 = vpop.f32.mrf.mxu2 }
 0x2b6   :  { %v728_v40 = vadd.f32 %v727_v29, %v1978_v9  ;;  %v746_v31 = vpop.f32.mrf.mxu3 }
 0x2b7   :  { %v747_v61 = vadd.f32 %v746_v31, %v1978_v9 }
 0x2b8   :  { %756 = vst [vmem:[#allocation2 + $0x60] sm:$0xff] %v728_v40 }
 0x2b9   :  { %757 = vst [vmem:[#allocation2 + $0x68] sm:$0xff] %v747_v61  ;;  %v1586_v61 = vpop.eup %1585 }
 0x2bd   :  { %v729_v1 = vpop.f32.mrf.mxu2 }
 0x2be   :  { %v730_v59 = vadd.f32 %v729_v1, %v1982_v27  ;;  %v748_v0 = vpop.f32.mrf.mxu3 }
 0x2bf   :  { %v749_v2 = vadd.f32 %v748_v0, %v1982_v27  ;;  %v1588_v0 = vpop.eup %1587 }
 0x2c0   :  { %758 = vst [vmem:[#allocation2 + $0x70] sm:$0xff] %v730_v59  ;;  %v1082_v54 = vmul.f32 0.6931472, %v1588_v0 }
 0x2c1   :  { %759 = vst [vmem:[#allocation2 + $0x78] sm:$0xff] %v749_v2  ;;  %v963_v2 = vpop.f32.mrf.mxu0 }
 0x2c2   :  { %v1089_v39 = vsub.f32 %v1082_v54, %v1086_v47 }
 0x2c5   :  { %v882_v14 = vpop.f32.mrf.mxu2 }
 0x2c6   :  { %v901_v15 = vpop.f32.mrf.mxu3  ;;  %v883_v38 = vadd.f32 %v882_v14, %v2027_v48  ;;  %v1088_v14 = vmul.f32 0.6931472, %v1586_v61 }
 0x2c7   :  { %v902_v29 = vadd.f32 %v901_v15, %v2029_v49 }
 0x2c8   :  { %v985_v51 = vadd.f32 %v956_v5, %v883_v38 }
 0x2c9   :  { %v986_v10 = vadd.f32 %v975_v8, %v902_v29 }
 0x2cb   :  { %v994_v8 = vadd.f32 %v986_v10, %v1909_v23 }
 0x2cd   :  { %v884_v28 = vpop.f32.mrf.mxu2 }
 0x2ce   :  { %v903_v33 = vpop.f32.mrf.mxu3  ;;  %v885_v6 = vadd.f32 %v884_v28, %v2031_v50  ;;  %v1590_v50 = vpop.eup %1589 }
 0x2cf   :  { %v904_v37 = vadd.f32 %v903_v33, %v2033_v53  ;;  %v1084_v5 = vmul.f32 0.6931472, %v1590_v50 }
 0x2d0   :  { %v987_v1 = vadd.f32 %v958_v21, %v885_v6  ;;  %v993_v21 = vadd.f32 %v985_v51, %v1909_v23  ;;  %v1138_v6 = vpop.f32.mrf.mxu0 }
 0x2d1   :  { %v1090_v34 = vsub.f32 %v1084_v5, %v1088_v14 }
 0x2d2   :  { %v995_v15 = vadd.f32 %v987_v1, %v1906_v44  ;;  %v1001_v57 = vmax.f32 %v993_v21, 0.0 }
 0x2d3   :  { %v1092_v7 = vpack.c.bf16 %v1090_v34, %v1090_v34 }
 0x2d4   :  { %v1003_v42 = vmax.f32 %v995_v15, 0.0 }
 0x2d5   :  { %v887_v20 = vpop.f32.mrf.mxu2 }
 0x2d6   :  { %v906_v45 = vpop.f32.mrf.mxu3  ;;  %v888_v25 = vadd.f32 %v887_v20, %v843_v11  ;;  %v1002_v20 = vmax.f32 %v994_v8, 0.0 }
 0x2d7   :  { %v907_v30 = vadd.f32 %v906_v45, %v862_v55  ;;  %v988_v55 = vadd.f32 %v977_v26, %v904_v37  ;;  %v1157_v37 = vpop.f32.mrf.mxu1 }
 0x2d8   :  { %v989_v43 = vadd.f32 %v961_v41, %v888_v25  ;;  %v1091_v41 = vpack.c.bf16 %v1089_v39, %v1089_v39  ;;  %v1171_v25 = vsel %vm134_vm0, %v1092_v7, 0  ;;  %v1140_v38 = vpop.f32.mrf.mxu0 }
 0x2d9   :  { %v990_v40 = vadd.f32 %v980_v60, %v907_v30  ;;  %v996_v19 = vadd.f32 %v988_v55, %v1906_v44  ;;  %v1009_v60 = vpack.c.bf16 %v1003_v42, %v1001_v57  ;;  %v1592_v30 = vld [vmem:[%s2117_s2 + $0x8] sm:$0xff]  ;;  %s1620_s2 = smov [#allocation2]  }
 0x2da   :  { %v997_v53 = vadd.f32 %v989_v43, %v1899_v35  ;;  %v1168_v62 = vsel %vm134_vm0, %v1091_v41, 0  ;;  %s1364_s21 = sshll.u32 %s1620_s2, 4  ;;  %s1365_s21 = int_to_ptr.vmem [resolvable:$true] %s1364_s21 }
 0x2db   :  { %v998_v49 = vadd.f32 %v990_v40, %v1899_v35  ;;  %v1004_v17 = vmax.f32 %v996_v19, 0.0 }
 0x2dc   :  { %v1005_v22 = vmax.f32 %v997_v53, 0.0 }
 0x2dd   :  { %v889_v31 = vpop.f32.mrf.mxu2  ;;  %v1006_v28 = vmax.f32 %v998_v49, 0.0  ;;  %v1010_v45 = vpack.c.bf16 %v1004_v17, %v1002_v20 }
 0x2de   :  { %v890_v59 = vadd.f32 %v889_v31, %v845_v36  ;;  %v908_v11 = vpop.f32.mrf.mxu3 }
 0x2df   :  { %v909_v4 = vadd.f32 %v908_v11, %v864_v63  ;;  %v1159_v43 = vpop.f32.mrf.mxu1 }
 0x2e0   :  { %v991_v48 = vadd.f32 %v963_v2, %v890_v59  ;;  %v1143_v61 = vpop.f32.mrf.mxu0 }
 0x2e1   :  { %v992_v12 = vadd.f32 %v982_v58, %v909_v4 }
 0x2e2   :  { %v999_v36 = vadd.f32 %v991_v48, %v1891_v13 }
 0x2e3   :  { %v1000_v63 = vadd.f32 %v992_v12, %v1891_v13 }
 0x2e4   :  { %v1007_v26 = vmax.f32 %v999_v36, 0.0 }
 0x2e5   :  { %v1008_v33 = vmax.f32 %v1000_v63, 0.0 }
 0x2e6   :  { %v1011_v16 = vpack.c.bf16 %v1007_v26, %v1005_v22 }
 0x2e7   :  { %v1012_v18 = vpack.c.bf16 %v1008_v33, %v1006_v28  ;;  %v1162_v11 = vpop.f32.mrf.mxu1 }
 0x2e8   :  { %1019 = vmatpush.bf16.msrb.mxu2 %v1011_v16  ;;  %v1145_v51 = vpop.f32.mrf.mxu0 }
 0x2e9   :  { %1038 = vmatpush.bf16.msrb.mxu3 %v1012_v18 }
 0x2ec   :  { %1020 = vmatpush.bf16.msrb.mxu2 %v1009_v60 }
 0x2ed   :  { %1039 = vmatpush.bf16.msrb.mxu3 %v1010_v45 }
 0x2ef   :  { %1458 = vmatmul.msk.bf16.vlgmr.msrb.gmra.mxu2 %vm407_vm2, %v1923_v24  ;;  %v1164_v53 = vpop.f32.mrf.mxu1 }
 0x2f0   :  { %1180 = vmatpush.bf16.msra.mxu2 %v1168_v62  ;;  %1460 = vmatmul.msk.bf16.vlgmr.msrb.gmra.mxu3 %vm407_vm2, %v1923_v24  ;;  %v1256_v49 = vpop.f32.mrf.mxu0 }
 0x2f1   :  { %1199 = vmatpush.bf16.msra.mxu3 %v1171_v25 }
 0x2f7   :  { %v1275_v12 = vpop.f32.mrf.mxu1 }
 0x2f8   :  { %v1258_v36 = vpop.f32.mrf.mxu0 }
 0x2ff   :  { %1459 = vmatmul.msk.bf16.gmra.mxu2 %vm407_vm2, %v1938_v52  ;;  %v1277_v54 = vpop.f32.mrf.mxu1 }
 0x300   :  { %1461 = vmatmul.msk.bf16.gmra.mxu3 %vm407_vm2, %v1938_v52  ;;  %v1261_v5 = vpop.f32.mrf.mxu0 }
 0x307   :  { %v1280_v22 = vpop.f32.mrf.mxu1 }
 0x308   :  { %v1263_v60 = vpop.f32.mrf.mxu0 }
 0x30f   :  { %1468 = vmatmul.msk.bf16.vlgmr.msra.gmra.mxu2 %vm127_vm1, %v2017_v46 }
 0x310   :  { %1470 = vmatmul.msk.bf16.vlgmr.msra.gmra.mxu3 %vm127_vm1, %v2017_v46 }
 0x31f   :  { %1469 = vmatmul.msk.bf16.gmra.mxu2 %vm127_vm1, %v1592_v30 }
 0x320   :  { %1471 = vmatmul.msk.bf16.gmra.mxu3 %vm127_vm1, %v1592_v30  ;;  %v1282_v30 = vpop.f32.mrf.mxu1 }
 0x372   :  { %v1022_v56 = vpop.f32.mrf.mxu2 }
 0x373   :  { %v1023_v29 = vadd.f32 %v1022_v56, %v1970_v3  ;;  %v1041_v40 = vpop.f32.mrf.mxu3 }
 0x374   :  { %v1042_v31 = vadd.f32 %v1041_v40, %v1970_v3 }
 0x375   :  { %1052 = vst [vmem:[#allocation2 + $0x80] sm:$0xff] %v1023_v29 }
 0x376   :  { %1053 = vst [vmem:[#allocation2 + $0x88] sm:$0xff] %v1042_v31 }
 0x37a   :  { %v1024_v46 = vpop.f32.mrf.mxu2 }
 0x37b   :  { %v1025_v1 = vadd.f32 %v1024_v46, %v1974_v32  ;;  %v1043_v59 = vpop.f32.mrf.mxu3 }
 0x37c   :  { %v1044_v0 = vadd.f32 %v1043_v59, %v1974_v32 }
 0x37d   :  { %1054 = vst [vmem:[#allocation2 + $0x90] sm:$0xff] %v1025_v1 }
 0x37e   :  { %1055 = vst [vmem:[#allocation2 + $0x98] sm:$0xff] %v1044_v0 }
 0x382   :  { %v1027_v55 = vpop.f32.mrf.mxu2 }
 0x383   :  { %v1028_v2 = vadd.f32 %v1027_v55, %v1978_v9  ;;  %v1046_v4 = vpop.f32.mrf.mxu3 }
 0x384   :  { %v1047_v50 = vadd.f32 %v1046_v4, %v1978_v9 }
 0x385   :  { %1056 = vst [vmem:[#allocation2 + $0xa0] sm:$0xff] %v1028_v2 }
 0x386   :  { %1057 = vst [vmem:[#allocation2 + $0xa8] sm:$0xff] %v1047_v50 }
 0x38a   :  { %v1029_v58 = vpop.f32.mrf.mxu2 }
 0x38b   :  { %v1030_v48 = vadd.f32 %v1029_v58, %v1982_v27  ;;  %v1048_v47 = vpop.f32.mrf.mxu3 }
 0x38c   :  { %v1049_v10 = vadd.f32 %v1048_v47, %v1982_v27 }
 0x38d   :  { %1058 = vst [vmem:[#allocation2 + $0xb0] sm:$0xff] %v1030_v48 }
 0x38e   :  { %1059 = vst [vmem:[#allocation2 + $0xb8] sm:$0xff] %v1049_v10 }
 0x392   :  { %v1182_v14 = vpop.f32.mrf.mxu2 }
 0x393   :  { %v1201_v15 = vpop.f32.mrf.mxu3  ;;  %v1183_v34 = vadd.f32 %v1182_v14, %v1138_v6 }
 0x394   :  { %v1202_v16 = vadd.f32 %v1201_v15, %v1157_v37 }
 0x395   :  { %v1285_v62 = vadd.f32 %v1256_v49, %v1183_v34 }
 0x396   :  { %v1286_v29 = vadd.f32 %v1275_v12, %v1202_v16 }
 0x397   :  { %v1293_v46 = vadd.f32 %v1285_v62, %v1909_v23 }
 0x398   :  { %v1294_v59 = vadd.f32 %v1286_v29, %v1909_v23 }
 0x399   :  { %v1301_v50 = vmax.f32 %v1293_v46, 0.0 }
 0x39a   :  { %v1184_v19 = vpop.f32.mrf.mxu2 }
 0x39b   :  { %v1203_v63 = vpop.f32.mrf.mxu3  ;;  %v1185_v28 = vadd.f32 %v1184_v19, %v1140_v38 }
 0x39c   :  { %v1204_v33 = vadd.f32 %v1203_v63, %v1159_v43 }
 0x39d   :  { %v1287_v57 = vadd.f32 %v1258_v36, %v1185_v28 }
 0x39e   :  { %v1288_v7 = vadd.f32 %v1277_v54, %v1204_v33 }
 0x39f   :  { %v1295_v6 = vadd.f32 %v1287_v57, %v1906_v44 }
 0x3a0   :  { %v1296_v40 = vadd.f32 %v1288_v7, %v1906_v44 }
 0x3a1   :  { %v1303_v55 = vmax.f32 %v1295_v6, 0.0 }
 0x3a2   :  { %v1187_v21 = vpop.f32.mrf.mxu2 }
 0x3a3   :  { %v1206_v26 = vpop.f32.mrf.mxu3  ;;  %v1188_v39 = vadd.f32 %v1187_v21, %v1143_v61 }
 0x3a4   :  { %v1207_v8 = vadd.f32 %v1206_v26, %v1162_v11 }
 0x3a5   :  { %v1289_v42 = vadd.f32 %v1261_v5, %v1188_v39 }
 0x3a6   :  { %v1290_v17 = vadd.f32 %v1280_v22, %v1207_v8 }
 0x3a7   :  { %v1297_v25 = vadd.f32 %v1289_v42, %v1899_v35 }
 0x3a8   :  { %v1298_v38 = vadd.f32 %v1290_v17, %v1899_v35  ;;  %v1304_v35 = vmax.f32 %v1296_v40, 0.0 }
 0x3a9   :  { %v1305_v61 = vmax.f32 %v1297_v25, 0.0 }
 0x3aa   :  { %v1189_v18 = vpop.f32.mrf.mxu2  ;;  %v1306_v11 = vmax.f32 %v1298_v38, 0.0 }
 0x3ab   :  { %v1190_v41 = vadd.f32 %v1189_v18, %v1145_v51  ;;  %v1208_v20 = vpop.f32.mrf.mxu3  ;;  %v1302_v51 = vmax.f32 %v1294_v59, 0.0 }
 0x3ac   :  { %v1209_v45 = vadd.f32 %v1208_v20, %v1164_v53  ;;  %v1309_v53 = vpack.c.bf16 %v1303_v55, %v1301_v50 }
 0x3ad   :  { %v1291_v56 = vadd.f32 %v1263_v60, %v1190_v41  ;;  %v1310_v44 = vpack.c.bf16 %v1304_v35, %v1302_v51 }
 0x3ae   :  { %v1292_v43 = vadd.f32 %v1282_v30, %v1209_v45 }
 0x3af   :  { %v1299_v37 = vadd.f32 %v1291_v56, %v1891_v13 }
 0x3b0   :  { %v1300_v31 = vadd.f32 %v1292_v43, %v1891_v13 }
 0x3b1   :  { %v1307_v1 = vmax.f32 %v1299_v37, 0.0 }
 0x3b2   :  { %v1308_v0 = vmax.f32 %v1300_v31, 0.0 }
 0x3b3   :  { %v1311_v2 = vpack.c.bf16 %v1307_v1, %v1305_v61 }
 0x3b4   :  { %v1312_v4 = vpack.c.bf16 %v1308_v0, %v1306_v11 }
 0x3b5   :  { %1319 = vmatpush.bf16.msrb.mxu2 %v1311_v2 }
 0x3b6   :  { %1338 = vmatpush.bf16.msrb.mxu3 %v1312_v4 }
 0x3b9   :  { %1320 = vmatpush.bf16.msrb.mxu2 %v1309_v53 }
 0x3ba   :  { %1339 = vmatpush.bf16.msrb.mxu3 %v1310_v44 }
 0x3bc   :  { %1476 = vmatmul.msk.bf16.vlgmr.msrb.gmra.mxu2 %vm407_vm2, %v1923_v24 }
 0x3bd   :  { %1478 = vmatmul.msk.bf16.vlgmr.msrb.gmra.mxu3 %vm407_vm2, %v1923_v24 }
 0x3cc   :  { %1477 = vmatmul.msk.bf16.gmra.mxu2 %vm407_vm2, %v1938_v52 }
 0x3cd   :  { %1479 = vmatmul.msk.bf16.gmra.mxu3 %vm407_vm2, %v1938_v52 }
 0x43f   :  { %v1322_v13 = vpop.f32.mrf.mxu2 }
 0x440   :  { %v1323_v23 = vadd.f32 %v1322_v13, %v1970_v3  ;;  %v1341_v58 = vpop.f32.mrf.mxu3 }
 0x441   :  { %v1342_v48 = vadd.f32 %v1341_v58, %v1970_v3 }
 0x442   :  { %1352 = vst [vmem:[#allocation2 + $0xc0] sm:$0xff] %v1323_v23 }
 0x443   :  { %1353 = vst [vmem:[#allocation2 + $0xc8] sm:$0xff] %v1342_v48 }
 0x447   :  { %v1324_v47 = vpop.f32.mrf.mxu2 }
 0x448   :  { %v1325_v10 = vadd.f32 %v1324_v47, %v1974_v32  ;;  %v1343_v49 = vpop.f32.mrf.mxu3 }
 0x449   :  { %v1344_v24 = vadd.f32 %v1343_v49, %v1974_v32 }
 0x44a   :  { %1354 = vst [vmem:[#allocation2 + $0xd0] sm:$0xff] %v1325_v10 }
 0x44b   :  { %1355 = vst [vmem:[#allocation2 + $0xd8] sm:$0xff] %v1344_v24 }
 0x44f   :  { %v1327_v12 = vpop.f32.mrf.mxu2 }
 0x450   :  { %v1328_v14 = vadd.f32 %v1327_v12, %v1978_v9  ;;  %v1346_v52 = vpop.f32.mrf.mxu3 }
 0x451   :  { %v1347_v15 = vadd.f32 %v1346_v52, %v1978_v9 }
 0x452   :  { %1356 = vst [vmem:[#allocation2 + $0xe0] sm:$0xff] %v1328_v14 }
 0x453   :  { %1357 = vst [vmem:[#allocation2 + $0xe8] sm:$0xff] %v1347_v15 }
 0x457   :  { %v1329_v3 = vpop.f32.mrf.mxu2 }
 0x458   :  { %v1330_v36 = vadd.f32 %v1329_v3, %v1982_v27  ;;  %v1348_v32 = vpop.f32.mrf.mxu3 }
 0x459   :  { %v1349_v54 = vadd.f32 %v1348_v32, %v1982_v27 }
 0x45a   :  { %1358 = vst [vmem:[#allocation2 + $0xf0] sm:$0xff] %v1330_v36 }
 0x45b   :  { %1359 = vst [vmem:[#allocation2 + $0xf8] sm:$0xff] %v1349_v54 }
 0x45c   :  { %1372 = dma.vmem_to_hbm [thread:$0]  %s1365_s21, 4096, %s1367_s24, [#allocation3], %s1621_s25, %s1621_s25, %s1622_s26  }
 0x45d   :  { %1617 = dma.done.wait [#allocation3], 4096  }
 0x45e   :  { %1618 = vsyncadd [#allocation3], 4294963200 }
 0x45f   :  { %1377 = vsyncpa [#allocation3], 1 }

</bundles_post_ra>
